<compile_context>
chip_gen: v7x
topology: tpu7x:2x2x1
jax: 0.10.0
libtpu: 0.0.40
codegen_flags: <defaults>
</compile_context>

<pallas_src>
import math

import jax
import jax.numpy as jnp
from jax.experimental import pallas as pl
from jax.experimental.pallas import tpu as pltpu


# ---------------------------------------------------------------------------
# Fused kernel factory (static padded dims captured by closure)
# ---------------------------------------------------------------------------
def _make_gin_kernel(h_p, f1_p, out_p, reorder_l1):
    def kernel(adj_ref, x_ref, pool_ref, w1_1_ref, w1_23_ref, w2_ref,
               wf1_ref, wf2_ref, vec_ref, out_ref, h_a, h_b):
        adj = adj_ref[...]                                   # bf16 [n_p, n_p]

        def epilogue(pre, layer, h_out_ref):
            # pre: f32 [n_p, h_p] = aggregated features @ W1 (bias folded into shift)
            sc = vec_ref[3 * layer + 0:3 * layer + 1, :h_p]  # BN scale
            sh = vec_ref[3 * layer + 1:3 * layer + 2, :h_p]  # b1*scale + BN shift
            b2 = vec_ref[3 * layer + 2:3 * layer + 3, :h_p]
            h = jnp.maximum(pre * sc + sh, 0.0)
            h = jnp.dot(h.astype(jnp.bfloat16), w2_ref[layer],
                        preferred_element_type=jnp.float32) + b2
            h_out_ref[...] = jnp.maximum(h, 0.0).astype(jnp.bfloat16)

        # ---- conv1: (A + (1+eps) I) aggregation folded into adj on the host ----
        if reorder_l1:
            # in_dim > h_dim: shrink the N^2 matmul width to h_p.
            xw = jnp.dot(x_ref[...], w1_1_ref[...],
                         preferred_element_type=jnp.float32)
            pre1 = jnp.dot(adj, xw.astype(jnp.bfloat16),
                           preferred_element_type=jnp.float32)
        else:
            agg = jnp.dot(adj, x_ref[...], preferred_element_type=jnp.float32)
            pre1 = jnp.dot(agg.astype(jnp.bfloat16), w1_1_ref[...],
                           preferred_element_type=jnp.float32)
        epilogue(pre1, 0, h_a)

        # ---- conv2 (reads h_a, writes h_b) ----
        agg2 = jnp.dot(adj, h_a[...], preferred_element_type=jnp.float32)
        pre2 = jnp.dot(agg2.astype(jnp.bfloat16), w1_23_ref[0],
                       preferred_element_type=jnp.float32)
        epilogue(pre2, 1, h_b)

        # h1 is no longer needed by any conv -> pool it now, then reuse its buffer.
        pool = pool_ref[...]                                 # bf16 [g_p, n_p]
        p1 = jnp.dot(pool, h_a[...], preferred_element_type=jnp.float32)

        # ---- conv3 (reads h_b, writes h_a — buffer reuse) ----
        agg3 = jnp.dot(adj, h_b[...], preferred_element_type=jnp.float32)
        pre3 = jnp.dot(agg3.astype(jnp.bfloat16), w1_23_ref[1],
                       preferred_element_type=jnp.float32)
        epilogue(pre3, 2, h_a)

        p2 = jnp.dot(pool, h_b[...], preferred_element_type=jnp.float32)
        p3 = jnp.dot(pool, h_a[...], preferred_element_type=jnp.float32)

        # ---- FFN: concat done as split-Wf1 sum; Dropout(0.5) identity in eval ----
        bf1 = vec_ref[9:10, :f1_p]
        bf2 = vec_ref[10:11, :out_p]
        z = (jnp.dot(p1.astype(jnp.bfloat16), wf1_ref[0],
                     preferred_element_type=jnp.float32)
             + jnp.dot(p2.astype(jnp.bfloat16), wf1_ref[1],
                       preferred_element_type=jnp.float32)
             + jnp.dot(p3.astype(jnp.bfloat16), wf1_ref[2],
                       preferred_element_type=jnp.float32)
             + bf1)
        z = jnp.maximum(z, 0.0)
        out_ref[...] = (jnp.dot(z.astype(jnp.bfloat16), wf2_ref[...],
                                preferred_element_type=jnp.float32) + bf2)

    return kernel


# ---------------------------------------------------------------------------
# Wrapper: padding, bias folding, operand packing, single pallas_call
# ---------------------------------------------------------------------------
def _round_up(x, m):
    return ((x + m - 1) // m) * m


def _pad_to(a, shape):
    return jnp.pad(a, [(0, t - s) for s, t in zip(a.shape, shape)])


def _nbytes(shape, itemsize):
    return math.prod(shape) * itemsize


@jax.jit
def gin_forward(x, adj_hat, pool_mat, params):
    n, in_dim = x.shape
    g = pool_mat.shape[0]
    h_dim = params["conv1"]["w1"].shape[1]
    out_dim = params["ffn"]["w2"].shape[1]

    # Padded, lane/sublane-dense, MXU-friendly sizes (zero padding is exact).
    n_p = _round_up(n, 128)
    g_p = _round_up(g, 16)                     # bf16 min sublane tile is 16
    in_p = _round_up(in_dim, 128)
    h_p = _round_up(h_dim, 128)
    f1_p = _round_up(3 * h_dim, 128)
    out_p = _round_up(out_dim, 128)
    vec_w = max(h_p, f1_p, out_p)
    reorder_l1 = in_dim > h_dim                # static choice

    # --- data operands (bf16 MXU operands; adjacency values 0/1/1+eps, eps=0 exact)
    adj_p = _pad_to(adj_hat, (n_p, n_p)).astype(jnp.bfloat16)
    x_p = _pad_to(x, (n_p, in_p)).astype(jnp.bfloat16)
    pool_p = _pad_to(pool_mat, (g_p, n_p)).astype(jnp.bfloat16)

    # --- stacked weight operands
    c1, c2, c3 = params["conv1"], params["conv2"], params["conv3"]
    ffn = params["ffn"]
    w1_1 = _pad_to(c1["w1"], (in_p, h_p)).astype(jnp.bfloat16)
    w1_23 = jnp.stack([_pad_to(c2["w1"], (h_p, h_p)),
                       _pad_to(c3["w1"], (h_p, h_p))]).astype(jnp.bfloat16)
    w2_s = jnp.stack([_pad_to(c["w2"], (h_p, h_p))
                      for c in (c1, c2, c3)]).astype(jnp.bfloat16)
    wf1_s = jnp.stack([_pad_to(ffn["w1"][i * h_dim:(i + 1) * h_dim], (h_p, f1_p))
                       for i in range(3)]).astype(jnp.bfloat16)
    wf2 = _pad_to(ffn["w2"], (f1_p, out_p)).astype(jnp.bfloat16)

    # --- all small f32 vectors packed into one (16, vec_w) operand
    #     rows: [sc1, sh1', b2_1, sc2, sh2', b2_2, sc3, sh3', b2_3, bf1, bf2, 0...]
    #     sh' = b1*scale + shift  (Linear bias folded into eval-mode BatchNorm)
    rows = []
    for c in (c1, c2, c3):
        shift_p = c["b1"] * c["scale"] + c["shift"]
        rows += [_pad_to(c["scale"], (1, vec_w)),
                 _pad_to(shift_p, (1, vec_w)),
                 _pad_to(c["b2"], (1, vec_w))]
    rows += [_pad_to(ffn["b1"], (1, vec_w)), _pad_to(ffn["b2"], (1, vec_w))]
    vecs = _pad_to(jnp.concatenate(rows, axis=0), (16, vec_w)).astype(jnp.float32)

    inputs = [adj_p, x_p, pool_p, w1_1, w1_23, w2_s, wf1_s, wf2, vecs]

    # --- VMEM budget from the actual resident footprint (+ margin, v7x 64 MiB cap)
    footprint = (
        _nbytes((n_p, n_p), 2) + _nbytes((n_p, in_p), 2) + _nbytes((g_p, n_p), 2)
        + _nbytes((in_p, h_p), 2) + _nbytes((2, h_p, h_p), 2)
        + _nbytes((3, h_p, h_p), 2) + _nbytes((3, h_p, f1_p), 2)
        + _nbytes((f1_p, out_p), 2) + _nbytes((16, vec_w), 4)
        + 2 * _nbytes((n_p, h_p), 2)          # 2 ping-pong activation scratch bufs
        + _nbytes((g_p, out_p), 4)            # output
    )
    vmem_budget = min(max(2 * footprint + (4 << 20), 16 << 20), 64 << 20)

    kernel = _make_gin_kernel(h_p, f1_p, out_p, reorder_l1)

    out_padded = pl.pallas_call(
        kernel,
        out_shape=jax.ShapeDtypeStruct((g_p, out_p), jnp.float32),
        in_specs=[pl.BlockSpec(memory_space=pltpu.MemorySpace.VMEM)] * len(inputs),
        out_specs=pl.BlockSpec(memory_space=pltpu.MemorySpace.VMEM),
        scratch_shapes=[pltpu.VMEM((n_p, h_p), jnp.bfloat16)] * 2,
        compiler_params=pltpu.CompilerParams(vmem_limit_bytes=int(vmem_budget)),
    )(*inputs)

    return out_padded[:g, :out_dim]


# ---------------------------------------------------------------------------
# Pure-JAX references
# ---------------------------------------------------------------------------
def _bf16_dot(a, b):
    return jnp.dot(a.astype(jnp.bfloat16), b.astype(jnp.bfloat16),
                   preferred_element_type=jnp.float32)


def gin_forward_reference_bf16(x, adj_hat, pool_mat, params, reorder_l1=False):
    """Follows the original module structurally (unfolded bias/BN, explicit concat)
    but matches the kernel's bf16-operand / f32-accumulate matmul precision and the
    layer-1 matmul ordering."""
    def conv(p, xx, reorder=False):
        if reorder:
            pre = _bf16_dot(adj_hat, _bf16_dot(xx, p["w1"]))
        else:
            pre = _bf16_dot(_bf16_dot(adj_hat, xx), p["w1"])
        h = jnp.maximum((pre + p["b1"]) * p["scale"] + p["shift"], 0.0)
        return jnp.maximum(_bf16_dot(h, p["w2"]) + p["b2"], 0.0)

    h1 = conv(params["conv1"], x, reorder=reorder_l1)
    h2 = conv(params["conv2"], h1)
    h3 = conv(params["conv3"], h2)
    cat = jnp.concatenate([_bf16_dot(pool_mat, h1),
                           _bf16_dot(pool_mat, h2),
                           _bf16_dot(pool_mat, h3)], axis=1)
    fp = params["ffn"]
    z = jnp.maximum(_bf16_dot(cat, fp["w1"]) + fp["b1"], 0.0)
    return _bf16_dot(z, fp["w2"]) + fp["b2"]


def gin_forward_reference_f32(x, adj_hat, pool_mat, params):
    """Full-fp32 reference (original module semantics, eval mode)."""
    def conv(p, xx):
        agg = adj_hat @ xx
        h = jnp.maximum((agg @ p["w1"] + p["b1"]) * p["scale"] + p["shift"], 0.0)
        return jnp.maximum(h @ p["w2"] + p["b2"], 0.0)

    h1 = conv(params["conv1"], x)
    h2 = conv(params["conv2"], h1)
    h3 = conv(params["conv3"], h2)
    cat = jnp.concatenate([pool_mat @ h1, pool_mat @ h2, pool_mat @ h3], axis=1)
    fp = params["ffn"]
    z = jnp.maximum(cat @ fp["w1"] + fp["b1"], 0.0)
    return z @ fp["w2"] + fp["b2"]


# ---------------------------------------------------------------------------
# Deterministic parameter / input construction
# ---------------------------------------------------------------------------
def make_conv_params(key, in_dim, h_dim):
    k = jax.random.split(key, 6)
    gamma = 1.0 + 0.1 * jax.random.normal(k[4], (1, h_dim), jnp.float32)
    beta = 0.1 * jax.random.normal(k[5], (1, h_dim), jnp.float32)
    running_mean = jnp.zeros((1, h_dim), jnp.float32)
    running_var = jnp.ones((1, h_dim), jnp.float32)
    scale = gamma / jnp.sqrt(running_var + 1e-5)
    shift = beta - running_mean * scale
    return dict(
        w1=0.2 * jax.random.normal(k[0], (in_dim, h_dim), jnp.float32),
        b1=0.1 * jax.random.normal(k[1], (1, h_dim), jnp.float32),
        w2=0.2 * jax.random.normal(k[2], (h_dim, h_dim), jnp.float32),
        b2=0.1 * jax.random.normal(k[3], (1, h_dim), jnp.float32),
        scale=scale, shift=shift,
    )


def make_ffn_params(key, h_dim, out_dim):
    k = jax.random.split(key, 4)
    return dict(
        w1=0.2 * jax.random.normal(k[0], (3 * h_dim, 3 * h_dim), jnp.float32),
        b1=0.1 * jax.random.normal(k[1], (1, 3 * h_dim), jnp.float32),
        w2=0.2 * jax.random.normal(k[2], (3 * h_dim, out_dim), jnp.float32),
        b2=0.1 * jax.random.normal(k[3], (1, out_dim), jnp.float32),
    )


if __name__ == "__main__":
    IN_DIM, H_DIM, OUT_DIM = 16, 32, 8
    N_NODES, N_GRAPHS = 16, 2          # nodes 0..7 -> graph 0, nodes 8..15 -> graph 1
    EPS = 0.0                          # GINConv default eps

    key = jax.random.PRNGKey(0)
    kx, k1, k2, k3, k4 = jax.random.split(key, 5)

    # Node features [N, in_dim]
    x = jax.random.normal(kx, (N_NODES, IN_DIM), jnp.float32)

    # edge_index: undirected ring within each graph of 8 nodes (PyG style [2, E]).
    src, dst = [], []
    for gi in range(N_GRAPHS):
        base = gi * 8
        for i in range(8):
            a, b = base + i, base + (i + 1) % 8
            src += [a, b]
            dst += [b, a]
    edge_index = jnp.array([src, dst], dtype=jnp.int32)

    # batch assignment vector
    batch = jnp.array([0] * 8 + [1] * 8, dtype=jnp.int32)

    # Dense adjacency with GIN self-term folded in: A_hat = A + (1+eps) I
    adj = jnp.zeros((N_NODES, N_NODES), jnp.float32)
    adj = adj.at[edge_index[1], edge_index[0]].add(1.0)
    adj_hat = adj + (1.0 + EPS) * jnp.eye(N_NODES, dtype=jnp.float32)

    # One-hot pooling matrix for global_add_pool: P[g, n] = (batch[n] == g)
    pool_mat = (batch[None, :] == jnp.arange(N_GRAPHS)[:, None]).astype(jnp.float32)

    params = dict(
        conv1=make_conv_params(k1, IN_DIM, H_DIM),
        conv2=make_conv_params(k2, H_DIM, H_DIM),
        conv3=make_conv_params(k3, H_DIM, H_DIM),
        ffn=make_ffn_params(k4, H_DIM, OUT_DIM),
    )

    out = gin_forward(x, adj_hat, pool_mat, params)
    out = jax.block_until_ready(out)
    assert out.shape == (N_GRAPHS, OUT_DIM)

    # Check against a precision-matched (bf16 matmuls, f32 accumulate) reference.
    ref_bf16 = gin_forward_reference_bf16(x, adj_hat, pool_mat, params,
                                          reorder_l1=(IN_DIM > H_DIM))
    assert jnp.allclose(out, ref_bf16, atol=5e-3, rtol=5e-3), \
        "mismatch vs bf16-matched JAX reference"

    # Sanity check vs the full-fp32 reference (bf16 MXU operands => loose bound).
    ref_f32 = gin_forward_reference_f32(x, adj_hat, pool_mat, params)
    max_err = float(jnp.max(jnp.abs(out - ref_f32)))
    assert max_err <= 0.1 * float(jnp.max(jnp.abs(ref_f32))) + 0.1, \
        "bf16 deviation from fp32 reference too large"

    print("KERNEL_OK")
</pallas_src>

<mosaic_0001>
module attributes {stable_mosaic.version = 11 : i64} {
  func.func @kernel(%arg0: memref<128x128xbf16, #tpu.memory_space<vmem>>, %arg1: memref<128x128xbf16, #tpu.memory_space<vmem>>, %arg2: memref<16x128xbf16, #tpu.memory_space<vmem>>, %arg3: memref<128x128xbf16, #tpu.memory_space<vmem>>, %arg4: memref<2x128x128xbf16, #tpu.memory_space<vmem>>, %arg5: memref<3x128x128xbf16, #tpu.memory_space<vmem>>, %arg6: memref<3x128x128xbf16, #tpu.memory_space<vmem>>, %arg7: memref<128x128xbf16, #tpu.memory_space<vmem>>, %arg8: memref<16x128xf32, #tpu.memory_space<vmem>>, %arg9: memref<16x128xf32, #tpu.memory_space<vmem>>, %arg10: memref<128x128xbf16, #tpu.memory_space<vmem>>, %arg11: memref<128x128xbf16, #tpu.memory_space<vmem>>) attributes {dimension_semantics = [], scalar_prefetch = 0 : i64, scratch_operands = 2 : i64, tpu.core_type = #tpu.core_type<tc>} {
    %c0 = arith.constant 0 : index
    %c0_0 = arith.constant 0 : index
    %0 = vector.load %arg0[%c0, %c0_0] : memref<128x128xbf16, #tpu.memory_space<vmem>>, vector<128x128xbf16>
    %c0_1 = arith.constant 0 : index
    %c0_2 = arith.constant 0 : index
    %1 = vector.load %arg1[%c0_1, %c0_2] : memref<128x128xbf16, #tpu.memory_space<vmem>>, vector<128x128xbf16>
    %cst = arith.constant dense<0.000000e+00> : vector<128x128xf32>
    %2 = tpu.matmul %0, %1, %cst {dimension_numbers = #tpu.dot_dimension_numbers<[1], [0], [0], [1], [0, 0, 1, 1], [], []>} : vector<128x128xbf16>, vector<128x128xbf16>, vector<128x128xf32> -> vector<128x128xf32>
    %3 = arith.truncf %2 : vector<128x128xf32> to vector<128x128xbf16>
    %c0_3 = arith.constant 0 : index
    %c0_4 = arith.constant 0 : index
    %4 = vector.load %arg3[%c0_3, %c0_4] : memref<128x128xbf16, #tpu.memory_space<vmem>>, vector<128x128xbf16>
    %cst_5 = arith.constant dense<0.000000e+00> : vector<128x128xf32>
    %5 = tpu.matmul %3, %4, %cst_5 {dimension_numbers = #tpu.dot_dimension_numbers<[1], [0], [0], [1], [0, 0, 1, 1], [], []>} : vector<128x128xbf16>, vector<128x128xbf16>, vector<128x128xf32> -> vector<128x128xf32>
    %c0_6 = arith.constant 0 : index
    %c0_7 = arith.constant 0 : index
    %6 = vector.load %arg8[%c0_6, %c0_7] : memref<16x128xf32, #tpu.memory_space<vmem>>, vector<1x128xf32>
    %c1 = arith.constant 1 : index
    %c0_8 = arith.constant 0 : index
    %7 = vector.load %arg8[%c1, %c0_8] : memref<16x128xf32, #tpu.memory_space<vmem>>, vector<1x128xf32>
    %c2 = arith.constant 2 : index
    %c0_9 = arith.constant 0 : index
    %8 = vector.load %arg8[%c2, %c0_9] : memref<16x128xf32, #tpu.memory_space<vmem>>, vector<1x128xf32>
    %9 = vector.broadcast %6 : vector<1x128xf32> to vector<128x128xf32>
    %10 = arith.mulf %5, %9 : vector<128x128xf32>
    %11 = vector.broadcast %7 : vector<1x128xf32> to vector<128x128xf32>
    %12 = arith.addf %10, %11 : vector<128x128xf32>
    %cst_10 = arith.constant 0.000000e+00 : f32
    %13 = vector.broadcast %cst_10 : f32 to vector<128x128xf32>
    %14 = arith.maximumf %12, %13 : vector<128x128xf32>
    %15 = arith.truncf %14 : vector<128x128xf32> to vector<128x128xbf16>
    %c0_11 = arith.constant 0 : index
    %c0_12 = arith.constant 0 : index
    %c0_13 = arith.constant 0 : index
    %16 = vector.load %arg5[%c0_11, %c0_12, %c0_13] : memref<3x128x128xbf16, #tpu.memory_space<vmem>>, vector<1x128x128xbf16>
    %17 = vector.shape_cast %16 : vector<1x128x128xbf16> to vector<128x128xbf16>
    %cst_14 = arith.constant dense<0.000000e+00> : vector<128x128xf32>
    %18 = tpu.matmul %15, %17, %cst_14 {dimension_numbers = #tpu.dot_dimension_numbers<[1], [0], [0], [1], [0, 0, 1, 1], [], []>} : vector<128x128xbf16>, vector<128x128xbf16>, vector<128x128xf32> -> vector<128x128xf32>
    %19 = vector.broadcast %8 : vector<1x128xf32> to vector<128x128xf32>
    %20 = arith.addf %18, %19 : vector<128x128xf32>
    %cst_15 = arith.constant 0.000000e+00 : f32
    %21 = vector.broadcast %cst_15 : f32 to vector<128x128xf32>
    %22 = arith.maximumf %20, %21 : vector<128x128xf32>
    %23 = arith.truncf %22 : vector<128x128xf32> to vector<128x128xbf16>
    %c0_16 = arith.constant 0 : index
    %c0_17 = arith.constant 0 : index
    %24 = vector.load %arg10[%c0_16, %c0_17] : memref<128x128xbf16, #tpu.memory_space<vmem>>, vector<128x128xbf16>
    tpu.vector_store %arg10[%c0_16, %c0_17], %23 {strides = array<i32>} : memref<128x128xbf16, #tpu.memory_space<vmem>>, vector<128x128xbf16>,
    %c0_18 = arith.constant 0 : index
    %c0_19 = arith.constant 0 : index
    %25 = vector.load %arg10[%c0_18, %c0_19] : memref<128x128xbf16, #tpu.memory_space<vmem>>, vector<128x128xbf16>
    %cst_20 = arith.constant dense<0.000000e+00> : vector<128x128xf32>
    %26 = tpu.matmul %0, %25, %cst_20 {dimension_numbers = #tpu.dot_dimension_numbers<[1], [0], [0], [1], [0, 0, 1, 1], [], []>} : vector<128x128xbf16>, vector<128x128xbf16>, vector<128x128xf32> -> vector<128x128xf32>
    %27 = arith.truncf %26 : vector<128x128xf32> to vector<128x128xbf16>
    %c0_21 = arith.constant 0 : index
    %c0_22 = arith.constant 0 : index
    %c0_23 = arith.constant 0 : index
    %28 = vector.load %arg4[%c0_21, %c0_22, %c0_23] : memref<2x128x128xbf16, #tpu.memory_space<vmem>>, vector<1x128x128xbf16>
    %29 = vector.shape_cast %28 : vector<1x128x128xbf16> to vector<128x128xbf16>
    %cst_24 = arith.constant dense<0.000000e+00> : vector<128x128xf32>
    %30 = tpu.matmul %27, %29, %cst_24 {dimension_numbers = #tpu.dot_dimension_numbers<[1], [0], [0], [1], [0, 0, 1, 1], [], []>} : vector<128x128xbf16>, vector<128x128xbf16>, vector<128x128xf32> -> vector<128x128xf32>
    %c3 = arith.constant 3 : index
    %c0_25 = arith.constant 0 : index
    %31 = vector.load %arg8[%c3, %c0_25] : memref<16x128xf32, #tpu.memory_space<vmem>>, vector<1x128xf32>
    %c4 = arith.constant 4 : index
    %c0_26 = arith.constant 0 : index
    %32 = vector.load %arg8[%c4, %c0_26] : memref<16x128xf32, #tpu.memory_space<vmem>>, vector<1x128xf32>
    %c5 = arith.constant 5 : index
    %c0_27 = arith.constant 0 : index
    %33 = vector.load %arg8[%c5, %c0_27] : memref<16x128xf32, #tpu.memory_space<vmem>>, vector<1x128xf32>
    %34 = vector.broadcast %31 : vector<1x128xf32> to vector<128x128xf32>
    %35 = arith.mulf %30, %34 : vector<128x128xf32>
    %36 = vector.broadcast %32 : vector<1x128xf32> to vector<128x128xf32>
    %37 = arith.addf %35, %36 : vector<128x128xf32>
    %cst_28 = arith.constant 0.000000e+00 : f32
    %38 = vector.broadcast %cst_28 : f32 to vector<128x128xf32>
    %39 = arith.maximumf %37, %38 : vector<128x128xf32>
    %40 = arith.truncf %39 : vector<128x128xf32> to vector<128x128xbf16>
    %c1_29 = arith.constant 1 : index
    %c0_30 = arith.constant 0 : index
    %c0_31 = arith.constant 0 : index
    %41 = vector.load %arg5[%c1_29, %c0_30, %c0_31] : memref<3x128x128xbf16, #tpu.memory_space<vmem>>, vector<1x128x128xbf16>
    %42 = vector.shape_cast %41 : vector<1x128x128xbf16> to vector<128x128xbf16>
    %cst_32 = arith.constant dense<0.000000e+00> : vector<128x128xf32>
    %43 = tpu.matmul %40, %42, %cst_32 {dimension_numbers = #tpu.dot_dimension_numbers<[1], [0], [0], [1], [0, 0, 1, 1], [], []>} : vector<128x128xbf16>, vector<128x128xbf16>, vector<128x128xf32> -> vector<128x128xf32>
    %44 = vector.broadcast %33 : vector<1x128xf32> to vector<128x128xf32>
    %45 = arith.addf %43, %44 : vector<128x128xf32>
    %cst_33 = arith.constant 0.000000e+00 : f32
    %46 = vector.broadcast %cst_33 : f32 to vector<128x128xf32>
    %47 = arith.maximumf %45, %46 : vector<128x128xf32>
    %48 = arith.truncf %47 : vector<128x128xf32> to vector<128x128xbf16>
    %c0_34 = arith.constant 0 : index
    %c0_35 = arith.constant 0 : index
    %49 = vector.load %arg11[%c0_34, %c0_35] : memref<128x128xbf16, #tpu.memory_space<vmem>>, vector<128x128xbf16>
    tpu.vector_store %arg11[%c0_34, %c0_35], %48 {strides = array<i32>} : memref<128x128xbf16, #tpu.memory_space<vmem>>, vector<128x128xbf16>,
    %c0_36 = arith.constant 0 : index
    %c0_37 = arith.constant 0 : index
    %50 = vector.load %arg2[%c0_36, %c0_37] : memref<16x128xbf16, #tpu.memory_space<vmem>>, vector<16x128xbf16>
    %c0_38 = arith.constant 0 : index
    %c0_39 = arith.constant 0 : index
    %51 = vector.load %arg10[%c0_38, %c0_39] : memref<128x128xbf16, #tpu.memory_space<vmem>>, vector<128x128xbf16>
    %cst_40 = arith.constant dense<0.000000e+00> : vector<16x128xf32>
    %52 = tpu.matmul %50, %51, %cst_40 {dimension_numbers = #tpu.dot_dimension_numbers<[1], [0], [0], [1], [0, 0, 1, 1], [], []>} : vector<16x128xbf16>, vector<128x128xbf16>, vector<16x128xf32> -> vector<16x128xf32>
    %c0_41 = arith.constant 0 : index
    %c0_42 = arith.constant 0 : index
    %53 = vector.load %arg11[%c0_41, %c0_42] : memref<128x128xbf16, #tpu.memory_space<vmem>>, vector<128x128xbf16>
    %cst_43 = arith.constant dense<0.000000e+00> : vector<128x128xf32>
    %54 = tpu.matmul %0, %53, %cst_43 {dimension_numbers = #tpu.dot_dimension_numbers<[1], [0], [0], [1], [0, 0, 1, 1], [], []>} : vector<128x128xbf16>, vector<128x128xbf16>, vector<128x128xf32> -> vector<128x128xf32>
    %55 = arith.truncf %54 : vector<128x128xf32> to vector<128x128xbf16>
    %c1_44 = arith.constant 1 : index
    %c0_45 = arith.constant 0 : index
    %c0_46 = arith.constant 0 : index
    %56 = vector.load %arg4[%c1_44, %c0_45, %c0_46] : memref<2x128x128xbf16, #tpu.memory_space<vmem>>, vector<1x128x128xbf16>
    %57 = vector.shape_cast %56 : vector<1x128x128xbf16> to vector<128x128xbf16>
    %cst_47 = arith.constant dense<0.000000e+00> : vector<128x128xf32>
    %58 = tpu.matmul %55, %57, %cst_47 {dimension_numbers = #tpu.dot_dimension_numbers<[1], [0], [0], [1], [0, 0, 1, 1], [], []>} : vector<128x128xbf16>, vector<128x128xbf16>, vector<128x128xf32> -> vector<128x128xf32>
    %c6 = arith.constant 6 : index
    %c0_48 = arith.constant 0 : index
    %59 = vector.load %arg8[%c6, %c0_48] : memref<16x128xf32, #tpu.memory_space<vmem>>, vector<1x128xf32>
    %c7 = arith.constant 7 : index
    %c0_49 = arith.constant 0 : index
    %60 = vector.load %arg8[%c7, %c0_49] : memref<16x128xf32, #tpu.memory_space<vmem>>, vector<1x128xf32>
    %c8 = arith.constant 8 : index
    %c0_50 = arith.constant 0 : index
    %61 = vector.load %arg8[%c8, %c0_50] : memref<16x128xf32, #tpu.memory_space<vmem>>, vector<1x128xf32>
    %62 = vector.broadcast %59 : vector<1x128xf32> to vector<128x128xf32>
    %63 = arith.mulf %58, %62 : vector<128x128xf32>
    %64 = vector.broadcast %60 : vector<1x128xf32> to vector<128x128xf32>
    %65 = arith.addf %63, %64 : vector<128x128xf32>
    %cst_51 = arith.constant 0.000000e+00 : f32
    %66 = vector.broadcast %cst_51 : f32 to vector<128x128xf32>
    %67 = arith.maximumf %65, %66 : vector<128x128xf32>
    %68 = arith.truncf %67 : vector<128x128xf32> to vector<128x128xbf16>
    %c2_52 = arith.constant 2 : index
    %c0_53 = arith.constant 0 : index
    %c0_54 = arith.constant 0 : index
    %69 = vector.load %arg5[%c2_52, %c0_53, %c0_54] : memref<3x128x128xbf16, #tpu.memory_space<vmem>>, vector<1x128x128xbf16>
    %70 = vector.shape_cast %69 : vector<1x128x128xbf16> to vector<128x128xbf16>
    %cst_55 = arith.constant dense<0.000000e+00> : vector<128x128xf32>
    %71 = tpu.matmul %68, %70, %cst_55 {dimension_numbers = #tpu.dot_dimension_numbers<[1], [0], [0], [1], [0, 0, 1, 1], [], []>} : vector<128x128xbf16>, vector<128x128xbf16>, vector<128x128xf32> -> vector<128x128xf32>
    %72 = vector.broadcast %61 : vector<1x128xf32> to vector<128x128xf32>
    %73 = arith.addf %71, %72 : vector<128x128xf32>
    %cst_56 = arith.constant 0.000000e+00 : f32
    %74 = vector.broadcast %cst_56 : f32 to vector<128x128xf32>
    %75 = arith.maximumf %73, %74 : vector<128x128xf32>
    %76 = arith.truncf %75 : vector<128x128xf32> to vector<128x128xbf16>
    %c0_57 = arith.constant 0 : index
    %c0_58 = arith.constant 0 : index
    %77 = vector.load %arg10[%c0_57, %c0_58] : memref<128x128xbf16, #tpu.memory_space<vmem>>, vector<128x128xbf16>
    tpu.vector_store %arg10[%c0_57, %c0_58], %76 {strides = array<i32>} : memref<128x128xbf16, #tpu.memory_space<vmem>>, vector<128x128xbf16>,
    %c0_59 = arith.constant 0 : index
    %c0_60 = arith.constant 0 : index
    %78 = vector.load %arg11[%c0_59, %c0_60] : memref<128x128xbf16, #tpu.memory_space<vmem>>, vector<128x128xbf16>
    %cst_61 = arith.constant dense<0.000000e+00> : vector<16x128xf32>
    %79 = tpu.matmul %50, %78, %cst_61 {dimension_numbers = #tpu.dot_dimension_numbers<[1], [0], [0], [1], [0, 0, 1, 1], [], []>} : vector<16x128xbf16>, vector<128x128xbf16>, vector<16x128xf32> -> vector<16x128xf32>
    %c0_62 = arith.constant 0 : index
    %c0_63 = arith.constant 0 : index
    %80 = vector.load %arg10[%c0_62, %c0_63] : memref<128x128xbf16, #tpu.memory_space<vmem>>, vector<128x128xbf16>
    %cst_64 = arith.constant dense<0.000000e+00> : vector<16x128xf32>
    %81 = tpu.matmul %50, %80, %cst_64 {dimension_numbers = #tpu.dot_dimension_numbers<[1], [0], [0], [1], [0, 0, 1, 1], [], []>} : vector<16x128xbf16>, vector<128x128xbf16>, vector<16x128xf32> -> vector<16x128xf32>
    %c9 = arith.constant 9 : index
    %c0_65 = arith.constant 0 : index
    %82 = vector.load %arg8[%c9, %c0_65] : memref<16x128xf32, #tpu.memory_space<vmem>>, vector<1x128xf32>
    %c10 = arith.constant 10 : index
    %c0_66 = arith.constant 0 : index
    %83 = vector.load %arg8[%c10, %c0_66] : memref<16x128xf32, #tpu.memory_space<vmem>>, vector<1x128xf32>
    %84 = arith.truncf %52 : vector<16x128xf32> to vector<16x128xbf16>
    %c0_67 = arith.constant 0 : index
    %c0_68 = arith.constant 0 : index
    %c0_69 = arith.constant 0 : index
    %85 = vector.load %arg6[%c0_67, %c0_68, %c0_69] : memref<3x128x128xbf16, #tpu.memory_space<vmem>>, vector<1x128x128xbf16>
    %86 = vector.shape_cast %85 : vector<1x128x128xbf16> to vector<128x128xbf16>
    %cst_70 = arith.constant dense<0.000000e+00> : vector<16x128xf32>
    %87 = tpu.matmul %84, %86, %cst_70 {dimension_numbers = #tpu.dot_dimension_numbers<[1], [0], [0], [1], [0, 0, 1, 1], [], []>} : vector<16x128xbf16>, vector<128x128xbf16>, vector<16x128xf32> -> vector<16x128xf32>
    %88 = arith.truncf %79 : vector<16x128xf32> to vector<16x128xbf16>
    %c1_71 = arith.constant 1 : index
    %c0_72 = arith.constant 0 : index
    %c0_73 = arith.constant 0 : index
    %89 = vector.load %arg6[%c1_71, %c0_72, %c0_73] : memref<3x128x128xbf16, #tpu.memory_space<vmem>>, vector<1x128x128xbf16>
    %90 = vector.shape_cast %89 : vector<1x128x128xbf16> to vector<128x128xbf16>
    %cst_74 = arith.constant dense<0.000000e+00> : vector<16x128xf32>
    %91 = tpu.matmul %88, %90, %cst_74 {dimension_numbers = #tpu.dot_dimension_numbers<[1], [0], [0], [1], [0, 0, 1, 1], [], []>} : vector<16x128xbf16>, vector<128x128xbf16>, vector<16x128xf32> -> vector<16x128xf32>
    %92 = arith.addf %87, %91 : vector<16x128xf32>
    %93 = arith.truncf %81 : vector<16x128xf32> to vector<16x128xbf16>
    %c2_75 = arith.constant 2 : index
    %c0_76 = arith.constant 0 : index
    %c0_77 = arith.constant 0 : index
    %94 = vector.load %arg6[%c2_75, %c0_76, %c0_77] : memref<3x128x128xbf16, #tpu.memory_space<vmem>>, vector<1x128x128xbf16>
    %95 = vector.shape_cast %94 : vector<1x128x128xbf16> to vector<128x128xbf16>
    %cst_78 = arith.constant dense<0.000000e+00> : vector<16x128xf32>
    %96 = tpu.matmul %93, %95, %cst_78 {dimension_numbers = #tpu.dot_dimension_numbers<[1], [0], [0], [1], [0, 0, 1, 1], [], []>} : vector<16x128xbf16>, vector<128x128xbf16>, vector<16x128xf32> -> vector<16x128xf32>
    %97 = arith.addf %92, %96 : vector<16x128xf32>
    %98 = vector.broadcast %82 : vector<1x128xf32> to vector<16x128xf32>
    %99 = arith.addf %97, %98 : vector<16x128xf32>
    %cst_79 = arith.constant 0.000000e+00 : f32
    %100 = vector.broadcast %cst_79 : f32 to vector<16x128xf32>
    %101 = arith.maximumf %99, %100 : vector<16x128xf32>
    %102 = arith.truncf %101 : vector<16x128xf32> to vector<16x128xbf16>
    %c0_80 = arith.constant 0 : index
    %c0_81 = arith.constant 0 : index
    %103 = vector.load %arg7[%c0_80, %c0_81] : memref<128x128xbf16, #tpu.memory_space<vmem>>, vector<128x128xbf16>
    %cst_82 = arith.constant dense<0.000000e+00> : vector<16x128xf32>
    %104 = tpu.matmul %102, %103, %cst_82 {dimension_numbers = #tpu.dot_dimension_numbers<[1], [0], [0], [1], [0, 0, 1, 1], [], []>} : vector<16x128xbf16>, vector<128x128xbf16>, vector<16x128xf32> -> vector<16x128xf32>
    %105 = vector.broadcast %83 : vector<1x128xf32> to vector<16x128xf32>
    %106 = arith.addf %104, %105 : vector<16x128xf32>
    %c0_83 = arith.constant 0 : index
    %c0_84 = arith.constant 0 : index
    %107 = vector.load %arg9[%c0_83, %c0_84] : memref<16x128xf32, #tpu.memory_space<vmem>>, vector<16x128xf32>
    tpu.vector_store %arg9[%c0_83, %c0_84], %106 {strides = array<i32>} : memref<16x128xf32, #tpu.memory_space<vmem>>, vector<16x128xf32>,
    return
  }
}

</mosaic_0001>

<bundles_post_ra>
// kernel: gin_forward.1
= control target key start
LH: loop header
LB: loop body
LE: loop exit
PB: predicated region body
PF: predicated region fallthrough
CT: control target
= control target key end

     0   :  { %vm3304_vm0 = vmmov 0   ;;  %s4013_s1 = inlined_call_operand.vmem [shape: bf16[128,128], index: 1, kind: input, shape index: {}]   ;;  %s4014_s0 = inlined_call_operand.vmem [shape: bf16[128,128], index: 0, kind: input, shape index: {}]   ;;  %s4015_s3 = inlined_call_operand.vmem [shape: bf16[128,128], index: 3, kind: input, shape index: {}]   ;;  %s4016_s5 = inlined_call_operand.vmem [shape: bf16[3,128,128], index: 5, kind: input, shape index: {}]   ;;  %s4017_s8 = inlined_call_operand.vmem [shape: f32[16,128], index: 8, kind: input, shape index: {}]   ;;  %s4018_s4 = inlined_call_operand.vmem [shape: bf16[2,128,128], index: 4, kind: input, shape index: {}]   ;;  %s4019_s2 = inlined_call_operand.vmem [shape: bf16[16,128], index: 2, kind: input, shape index: {}]   ;;  %s4020_s6 = inlined_call_operand.vmem [shape: bf16[3,128,128], index: 6, kind: input, shape index: {}]   ;;  %s4021_s7 = inlined_call_operand.vmem [shape: bf16[128,128], index: 7, kind: input, shape index: {}]   ;;  %s4022_s9 = inlined_call_operand.vmem [shape: f32[16,128], index: 9, kind: output, shape index: {}]  }
   0x1   :  { %v3198_v0 = vld [vmem:[%s4013_s1] sm:$0xff]   ;;  %v3199_v1 = vld [vmem:[%s4013_s1 + $0x8] sm:$0xff]   ;;  %v3200_v2 = vld [vmem:[%s4013_s1 + $0x10] sm:$0xff]  }
   0x2   :  { %2768 = vmatprep.subr.bf16.mxu0 %v3198_v0  ;;  %v3201_v3 = vld [vmem:[%s4013_s1 + $0x18] sm:$0xff]   ;;  %v3370_v4 = vld [vmem:[%s4014_s0] sm:$0xff]   ;;  %v3203_v6 = vld [vmem:[%s4013_s1 + $0x28] sm:$0xff]  }
   0x3   :  { %2769 = vmatpush3.bf16.msra.mxu0 %v3198_v0  ;;  %2784 = vmatprep.mubr.bf16.mxu0 %v3370_v4  ;;  %v3202_v5 = vld [vmem:[%s4013_s1 + $0x20] sm:$0xff]   ;;  %v3215_v8 = vld [vmem:[%s4015_s3 + $0x8] sm:$0xff]   ;;  %v3204_v9 = vld [vmem:[%s4013_s1 + $0x30] sm:$0xff]  }
   0x4   :  { %2770 = vmatprep.subr.bf16.mxu0 %v3199_v1  ;;  %v3214_v7 = vld [vmem:[%s4015_s3] sm:$0xff]   ;;  %v3216_v10 = vld [vmem:[%s4015_s3 + $0x10] sm:$0xff]   ;;  %v3205_v11 = vld [vmem:[%s4013_s1 + $0x38] sm:$0xff]  }
   0x5   :  { %2800 = vmatprep.subr.bf16.mxu1 %v3214_v7  ;;  %v3217_v12 = vld [vmem:[%s4015_s3 + $0x18] sm:$0xff]   ;;  %v3218_v13 = vld [vmem:[%s4015_s3 + $0x20] sm:$0xff]   ;;  %v3403_v14 = vld [vmem:[%s4014_s0 + $0x8] sm:$0xff]  }
   0x6   :  { %2801 = vmatpush3.bf16.msra.mxu1 %v3214_v7  ;;  %v3408_v15 = vld [vmem:[%s4014_s0 + $0x10] sm:$0xff]   ;;  %v3219_v16 = vld [vmem:[%s4015_s3 + $0x28] sm:$0xff]   ;;  %v3421_v18 = vld [vmem:[%s4014_s0 + $0x18] sm:$0xff]  }
   0x7   :  { %2771 = vmatpush3.bf16.msra.mxu0 %v3199_v1  ;;  %2802 = vmatprep.subr.bf16.mxu1 %v3215_v8  ;;  %v3220_v17 = vld [vmem:[%s4015_s3 + $0x30] sm:$0xff]   ;;  %v3426_v19 = vld [vmem:[%s4014_s0 + $0x20] sm:$0xff]   ;;  %v3433_v20 = vld [vmem:[%s4014_s0 + $0x28] sm:$0xff]  }
   0x8   :  { %2772 = vmatprep.subr.bf16.mxu0 %v3200_v2  ;;  %v3438_v21 = vld [vmem:[%s4014_s0 + $0x30] sm:$0xff]   ;;  %v3445_v22 = vld [vmem:[%s4014_s0 + $0x38] sm:$0xff]   ;;  %v3222_v24 = vld [vmem:[%s4016_s5] sm:$0xff]  }
   0x9   :  { %v3221_v23 = vld [vmem:[%s4015_s3 + $0x38] sm:$0xff]   ;;  %v3223_v25 = vld [vmem:[%s4016_s5 + $0x8] sm:$0xff]   ;;  %v3224_v26 = vld [vmem:[%s4016_s5 + $0x10] sm:$0xff]  }
   0xa   :  { %2803 = vmatpush3.bf16.msra.mxu1 %v3215_v8  ;;  %v3225_v27 = vld [vmem:[%s4016_s5 + $0x18] sm:$0xff]   ;;  %v3226_v28 = vld [vmem:[%s4016_s5 + $0x20] sm:$0xff]   ;;  %v3227_v53 = vld [vmem:[%s4016_s5 + $0x28] sm:$0xff]  }
   0xb   :  { %2773 = vmatpush3.bf16.msra.mxu0 %v3200_v2  ;;  %2804 = vmatprep.subr.bf16.mxu1 %v3216_v10  ;;  %v3228_v54 = vld [vmem:[%s4016_s5 + $0x30] sm:$0xff]   ;;  %v3229_v55 = vld [vmem:[%s4016_s5 + $0x38] sm:$0xff]   ;;  %v3479_v56 = vld [vmem:[%s4017_s8] ss:$0 sm:$0xff] }
   0xc   :  { %2774 = vmatprep.subr.bf16.mxu0 %v3201_v3  ;;  %v3484_v58 = vld [vmem:[%s4017_s8 + $0x1] ss:$0 sm:$0xff] }
   0xe   :  { %2805 = vmatpush3.bf16.msra.mxu1 %v3216_v10 }
   0xf   :  { %2775 = vmatpush3.bf16.msra.mxu0 %v3201_v3  ;;  %2806 = vmatprep.subr.bf16.mxu1 %v3217_v12 }
  0x10   :  { %2776 = vmatprep.subr.bf16.mxu0 %v3202_v5 }
  0x12   :  { %2807 = vmatpush3.bf16.msra.mxu1 %v3217_v12 }
  0x13   :  { %2777 = vmatpush3.bf16.msra.mxu0 %v3202_v5  ;;  %2808 = vmatprep.subr.bf16.mxu1 %v3218_v13 }
  0x14   :  { %2778 = vmatprep.subr.bf16.mxu0 %v3203_v6 }
  0x16   :  { %2809 = vmatpush3.bf16.msra.mxu1 %v3218_v13 }
  0x17   :  { %2779 = vmatpush3.bf16.msra.mxu0 %v3203_v6  ;;  %2810 = vmatprep.subr.bf16.mxu1 %v3219_v16 }
  0x18   :  { %2780 = vmatprep.subr.bf16.mxu0 %v3204_v9 }
  0x1a   :  { %2811 = vmatpush3.bf16.msra.mxu1 %v3219_v16 }
  0x1b   :  { %2781 = vmatpush3.bf16.msra.mxu0 %v3204_v9  ;;  %2812 = vmatprep.subr.bf16.mxu1 %v3220_v17 }
  0x1c   :  { %2782 = vmatprep.subr.bf16.mxu0 %v3205_v11 }
  0x1e   :  { %2813 = vmatpush3.bf16.msra.mxu1 %v3220_v17 }
  0x1f   :  { %2783 = vmatpush3.bf16.msra.mxu0 %v3205_v11  ;;  %2814 = vmatprep.subr.bf16.mxu1 %v3221_v23 }
  0x20   :  { %2832 = vmatprep.subr.bf16.mxu0 %v3222_v24 }
  0x22   :  { %2785 = vmatmul.mubr.bf16.vlgmr.msra.gmra.mrb[0].mxu0 %v3403_v14  ;;  %2815 = vmatpush3.bf16.msra.mxu1 %v3221_v23 }
  0x23   :  { %2788 = vmatprep.mubr.bf16.mxu0 %v3408_v15  ;;  %2833 = vmatpush3.bf16.msra.mxu0 %v3222_v24 }
  0x24   :  { %2834 = vmatprep.subr.bf16.mxu0 %v3223_v25 }
  0x27   :  { %2835 = vmatpush3.bf16.msra.mxu0 %v3223_v25 }
  0x28   :  { %2836 = vmatprep.subr.bf16.mxu0 %v3224_v26 }
  0x2a   :  { %2789 = vmatmul.mubr.bf16.gmra.mrb[4].mxu0 %v3421_v18 }
  0x2b   :  { %2792 = vmatprep.mubr.bf16.mxu0 %v3426_v19  ;;  %2837 = vmatpush3.bf16.msra.mxu0 %v3224_v26 }
  0x2c   :  { %2838 = vmatprep.subr.bf16.mxu0 %v3225_v27 }
  0x2f   :  { %2839 = vmatpush3.bf16.msra.mxu0 %v3225_v27 }
  0x30   :  { %2840 = vmatprep.subr.bf16.mxu0 %v3226_v28 }
  0x32   :  { %2793 = vmatmul.mubr.bf16.gmra.mrb[8].mxu0 %v3433_v20 }
  0x33   :  { %2796 = vmatprep.mubr.bf16.mxu0 %v3438_v21  ;;  %2841 = vmatpush3.bf16.msra.mxu0 %v3226_v28 }
  0x34   :  { %2842 = vmatprep.subr.bf16.mxu0 %v3227_v53 }
  0x37   :  { %2843 = vmatpush3.bf16.msra.mxu0 %v3227_v53 }
  0x38   :  { %2844 = vmatprep.subr.bf16.mxu0 %v3228_v54 }
  0x3a   :  { %2797 = vmatmul.mubr.bf16.gmra.mrb[12].mxu0 %v3445_v22 }
  0x3b   :  { %2845 = vmatpush3.bf16.msra.mxu0 %v3228_v54 }
  0x3c   :  { %2846 = vmatprep.subr.bf16.mxu0 %v3229_v55 }
  0x3f   :  { %2847 = vmatpush3.bf16.msra.mxu0 %v3229_v55 }
  0xf5   :  { %v2786_v29 = vpop.f32.mrb[0].mxu0 }
  0xf6   :  { %v195_v30 = vpop.f32.mrb[1].mxu0 }
  0xf7   :  { %v2787_v31 = vpop.f32.mrb[2].mxu0 }
  0xf8   :  { %v259_v32 = vpack.c.bf16 %v2787_v31, %v2786_v29  ;;  %v198_v33 = vpop.f32.mrb[3].mxu0 }
  0xf9   :  { %v258_v34 = vpack.c.bf16 %v198_v33, %v195_v30 }
  0xfb   :  { %2816 = vmatprep.mubr.bf16.mxu1 %v258_v34 }
  0xfc   :  { %2817 = vmatmul.mubr.bf16.vlgmr.msra.gmra.mrb[0].mxu1 %v259_v32 }
  0xfd   :  { %v2790_v35 = vpop.f32.mrb[4].mxu0 }
  0xfe   :  { %v211_v36 = vpop.f32.mrb[5].mxu0 }
  0xff   :  { %v2791_v37 = vpop.f32.mrb[6].mxu0 }
 0x100   :  { %v261_v38 = vpack.c.bf16 %v2791_v37, %v2790_v35  ;;  %v214_v39 = vpop.f32.mrb[7].mxu0 }
 0x101   :  { %v260_v40 = vpack.c.bf16 %v214_v39, %v211_v36 }
 0x103   :  { %2820 = vmatprep.mubr.bf16.mxu1 %v260_v40 }
 0x104   :  { %2821 = vmatmul.mubr.bf16.gmra.mrb[4].mxu1 %v261_v38 }
 0x105   :  { %v2794_v41 = vpop.f32.mrb[8].mxu0 }
 0x106   :  { %v227_v42 = vpop.f32.mrb[9].mxu0 }
 0x107   :  { %v2795_v43 = vpop.f32.mrb[10].mxu0 }
 0x108   :  { %v263_v44 = vpack.c.bf16 %v2795_v43, %v2794_v41  ;;  %v230_v45 = vpop.f32.mrb[11].mxu0 }
 0x109   :  { %v262_v46 = vpack.c.bf16 %v230_v45, %v227_v42 }
 0x10b   :  { %2824 = vmatprep.mubr.bf16.mxu1 %v262_v46 }
 0x10c   :  { %2825 = vmatmul.mubr.bf16.gmra.mrb[8].mxu1 %v263_v44 }
 0x10d   :  { %v2798_v47 = vpop.f32.mrb[12].mxu0 }
 0x10e   :  { %v243_v48 = vpop.f32.mrb[13].mxu0 }
 0x10f   :  { %v2799_v49 = vpop.f32.mrb[14].mxu0 }
 0x110   :  { %v265_v50 = vpack.c.bf16 %v2799_v49, %v2798_v47  ;;  %v246_v51 = vpop.f32.mrb[15].mxu0 }
 0x111   :  { %v264_v52 = vpack.c.bf16 %v246_v51, %v243_v48 }
 0x113   :  { %2828 = vmatprep.mubr.bf16.mxu1 %v264_v52 }
 0x114   :  { %2829 = vmatmul.mubr.bf16.gmra.mrb[12].mxu1 %v265_v50 }
 0x115   :  { %2880 = vmatprep.mubr.bf16.mxu1 %v3370_v4 }
 0x1cf   :  { %v2818_v57 = vpop.f32.mrb[0].mxu1 }
 0x1d0   :  { %v436_v59 = vmul.f32 %v2818_v57, %v3479_v56  ;;  %v364_v60 = vpop.f32.mrb[1].mxu1 }
 0x1d1   :  { %v434_v61 = vmul.f32 %v3479_v56, %v364_v60  ;;  %v2819_v62 = vpop.f32.mrb[2].mxu1 }
 0x1d2   :  { %v456_v63 = vadd.f32 %v3484_v58, %v436_v59  ;;  %v437_v0 = vmul.f32 %v2819_v62, %v3479_v56  ;;  %v367_v1 = vpop.f32.mrb[3].mxu1 }
 0x1d3   :  { %v454_v2 = vadd.f32 %v3484_v58, %v434_v61  ;;  %v435_v3 = vmul.f32 %v3479_v56, %v367_v1 }
 0x1d4   :  { %v457_v4 = vadd.f32 %v3484_v58, %v437_v0  ;;  %v472_v6 = vmax.f32 %v456_v63, 0.0 }
 0x1d5   :  { %v455_v5 = vadd.f32 %v3484_v58, %v435_v3  ;;  %v470_v8 = vmax.f32 %v454_v2, 0.0 }
 0x1d6   :  { %v473_v7 = vmax.f32 %v457_v4, 0.0 }
 0x1d7   :  { %v471_v9 = vmax.f32 %v455_v5, 0.0  ;;  %v2822_v10 = vpop.f32.mrb[4].mxu1 }
 0x1d8   :  { %v487_v11 = vpack.c.bf16 %v473_v7, %v472_v6  ;;  %v440_v12 = vmul.f32 %v2822_v10, %v3479_v56  ;;  %v380_v13 = vpop.f32.mrb[5].mxu1 }
 0x1d9   :  { %v438_v16 = vmul.f32 %v3479_v56, %v380_v13  ;;  %v2823_v17 = vpop.f32.mrb[6].mxu1  ;;  %v486_v23 = vpack.c.bf16 %v471_v9, %v470_v8  ;;  %v3234_v13 = vld [vmem:[%s4018_s4 + $0x20] sm:$0xff]  }
 0x1da   :  { %v460_v24 = vadd.f32 %v3484_v58, %v440_v12  ;;  %v441_v25 = vmul.f32 %v2823_v17, %v3479_v56  ;;  %v383_v26 = vpop.f32.mrb[7].mxu1  ;;  %v3233_v12 = vld [vmem:[%s4018_s4 + $0x18] sm:$0xff]   ;;  %v3236_v17 = vld [vmem:[%s4018_s4 + $0x30] sm:$0xff]  }
 0x1db   :  { %v458_v27 = vadd.f32 %v3484_v58, %v438_v16  ;;  %v439_v28 = vmul.f32 %v3479_v56, %v383_v26  ;;  %2848 = vmatprep.mubr.bf16.mxu0 %v486_v23  ;;  %v3235_v16 = vld [vmem:[%s4018_s4 + $0x28] sm:$0xff]   ;;  %v2399_v23 = vld [vmem:[%s4017_s8 + $0x2] ss:$0 sm:$0xff] }
 0x1dc   :  { %v461_v29 = vadd.f32 %v3484_v58, %v441_v25  ;;  %2849 = vmatmul.mubr.bf16.vlgmr.msra.gmra.mrb[16].mxu0 %v487_v11  ;;  %v476_v31 = vmax.f32 %v460_v24, 0.0  ;;  %v3230_v11 = vld [vmem:[%s4018_s4] sm:$0xff]  }
 0x1dd   :  { %v459_v30 = vadd.f32 %v3484_v58, %v439_v28  ;;  %v474_v33 = vmax.f32 %v458_v27, 0.0  ;;  %2896 = vmatprep.subr.bf16.mxu0 %v3230_v11 }
 0x1de   :  { %v477_v32 = vmax.f32 %v461_v29, 0.0  ;;  %2897 = vmatpush3.bf16.msra.mxu0 %v3230_v11 }
 0x1df   :  { %v475_v34 = vmax.f32 %v459_v30, 0.0  ;;  %v2826_v35 = vpop.f32.mrb[8].mxu1 }
 0x1e0   :  { %v444_v36 = vmul.f32 %v2826_v35, %v3479_v56  ;;  %v396_v37 = vpop.f32.mrb[9].mxu1  ;;  %v489_v38 = vpack.c.bf16 %v477_v32, %v476_v31 }
 0x1e1   :  { %v442_v39 = vmul.f32 %v3479_v56, %v396_v37  ;;  %v2827_v40 = vpop.f32.mrb[10].mxu1  ;;  %v488_v41 = vpack.c.bf16 %v475_v34, %v474_v33 }
 0x1e2   :  { %v464_v42 = vadd.f32 %v3484_v58, %v444_v36  ;;  %v445_v43 = vmul.f32 %v2827_v40, %v3479_v56  ;;  %v399_v44 = vpop.f32.mrb[11].mxu1 }
 0x1e3   :  { %v462_v45 = vadd.f32 %v3484_v58, %v442_v39  ;;  %v443_v46 = vmul.f32 %v3479_v56, %v399_v44  ;;  %2852 = vmatprep.mubr.bf16.mxu0 %v488_v41 }
 0x1e4   :  { %v465_v47 = vadd.f32 %v3484_v58, %v445_v43  ;;  %2853 = vmatmul.mubr.bf16.gmra.mrb[20].mxu0 %v489_v38  ;;  %v480_v49 = vmax.f32 %v464_v42, 0.0 }
 0x1e5   :  { %v463_v48 = vadd.f32 %v3484_v58, %v443_v46  ;;  %v478_v51 = vmax.f32 %v462_v45, 0.0 }
 0x1e6   :  { %v481_v50 = vmax.f32 %v465_v47, 0.0 }
 0x1e7   :  { %v479_v52 = vmax.f32 %v463_v48, 0.0  ;;  %v2830_v53 = vpop.f32.mrb[12].mxu1 }
 0x1e8   :  { %v448_v54 = vmul.f32 %v2830_v53, %v3479_v56  ;;  %v412_v55 = vpop.f32.mrb[13].mxu1  ;;  %v491_v57 = vpack.c.bf16 %v481_v50, %v480_v49 }
 0x1e9   :  { %v446_v59 = vmul.f32 %v3479_v56, %v412_v55  ;;  %v2831_v60 = vpop.f32.mrb[14].mxu1  ;;  %v490_v61 = vpack.c.bf16 %v479_v52, %v478_v51 }
 0x1ea   :  { %v468_v62 = vadd.f32 %v3484_v58, %v448_v54  ;;  %v449_v63 = vmul.f32 %v2831_v60, %v3479_v56  ;;  %v415_v0 = vpop.f32.mrb[15].mxu1 }
 0x1eb   :  { %v466_v1 = vadd.f32 %v3484_v58, %v446_v59  ;;  %v447_v2 = vmul.f32 %v3479_v56, %v415_v0  ;;  %2856 = vmatprep.mubr.bf16.mxu0 %v490_v61  ;;  %v3231_v56 = vld [vmem:[%s4018_s4 + $0x8] sm:$0xff]  }
 0x1ec   :  { %v469_v3 = vadd.f32 %v3484_v58, %v449_v63  ;;  %2857 = vmatmul.mubr.bf16.gmra.mrb[24].mxu0 %v491_v57  ;;  %v484_v5 = vmax.f32 %v468_v62, 0.0  ;;  %2898 = vmatprep.subr.bf16.mxu0 %v3231_v56 }
 0x1ed   :  { %v467_v4 = vadd.f32 %v3484_v58, %v447_v2  ;;  %v482_v7 = vmax.f32 %v466_v1, 0.0  ;;  %v3232_v58 = vld [vmem:[%s4018_s4 + $0x10] sm:$0xff]   ;;  %2899 = vmatpush3.bf16.msra.mxu0 %v3231_v56 }
 0x1ee   :  { %v485_v6 = vmax.f32 %v469_v3, 0.0  ;;  %2900 = vmatprep.subr.bf16.mxu0 %v3232_v58 }
 0x1ef   :  { %v483_v8 = vmax.f32 %v467_v4, 0.0 }
 0x1f0   :  { %v493_v9 = vpack.c.bf16 %v485_v6, %v484_v5 }
 0x1f1   :  { %v492_v10 = vpack.c.bf16 %v483_v8, %v482_v7  ;;  %2901 = vmatpush3.bf16.msra.mxu0 %v3232_v58 }
 0x1f2   :  { %2902 = vmatprep.subr.bf16.mxu0 %v3233_v12 }
 0x1f3   :  { %2860 = vmatprep.mubr.bf16.mxu0 %v492_v10 }
 0x1f4   :  { %2861 = vmatmul.mubr.bf16.gmra.mrb[28].mxu0 %v493_v9 }
 0x1f5   :  { %2903 = vmatpush3.bf16.msra.mxu0 %v3233_v12 }
 0x1f6   :  { %2904 = vmatprep.subr.bf16.mxu0 %v3234_v13 }
 0x1f9   :  { %2905 = vmatpush3.bf16.msra.mxu0 %v3234_v13 }
 0x1fa   :  { %2906 = vmatprep.subr.bf16.mxu0 %v3235_v16 }
 0x1fd   :  { %2907 = vmatpush3.bf16.msra.mxu0 %v3235_v16 }
 0x1fe   :  { %2908 = vmatprep.subr.bf16.mxu0 %v3236_v17 }
 0x201   :  { %2909 = vmatpush3.bf16.msra.mxu0 %v3236_v17 }
 0x2af   :  { %v2850_v24 = vpop.f32.mrb[16].mxu0 }
 0x2b0   :  { %v605_v25 = vadd.f32 %v2850_v24, %v2399_v23  ;;  %v596_v26 = vpop.f32.mrb[17].mxu0  ;;  %v3303_v24 = vmov 0.0  }
 0x2b1   :  { %v597_v27 = vadd.f32 %v2399_v23, %v596_v26  ;;  %v2851_v28 = vpop.f32.mrb[18].mxu0 }
 0x2b2   :  { %v608_v29 = vadd.f32 %v2851_v28, %v2399_v23  ;;  %v599_v30 = vpop.f32.mrb[19].mxu0  ;;  %v661_v32 = vmax.f32 %v605_v25, 0.0 }
 0x2b3   :  { %v600_v31 = vadd.f32 %v2399_v23, %v599_v30  ;;  %v659_v34 = vmax.f32 %v597_v27, 0.0 }
 0x2b4   :  { %v662_v33 = vmax.f32 %v608_v29, 0.0 }
 0x2b5   :  { %v660_v35 = vmax.f32 %v600_v31, 0.0 }
 0x2b6   :  { %v3542_v36 = vpack.c.bf16 %v662_v33, %v661_v32 }
 0x2b7   :  { %v3544_v37 = vpack.c.bf16 %v660_v35, %v659_v34  ;;  %v2854_v38 = vpop.f32.mrb[20].mxu0 }
 0x2b8   :  { %v621_v39 = vadd.f32 %v2854_v38, %v2399_v23  ;;  %v612_v40 = vpop.f32.mrb[21].mxu0 }
 0x2b9   :  { %v613_v41 = vadd.f32 %v2399_v23, %v612_v40  ;;  %v2855_v42 = vpop.f32.mrb[22].mxu0  ;;  %2864 = vmatprep.subr.bf16.mxu1 %v3544_v37 }
 0x2ba   :  { %v624_v43 = vadd.f32 %v2855_v42, %v2399_v23  ;;  %v615_v44 = vpop.f32.mrb[23].mxu0  ;;  %2865 = vmatpush3.bf16.msra.mxu1 %v3544_v37  ;;  %v665_v46 = vmax.f32 %v621_v39, 0.0 }
 0x2bb   :  { %v616_v45 = vadd.f32 %v2399_v23, %v615_v44  ;;  %2866 = vmatprep.subr.bf16.mxu1 %v3542_v36  ;;  %v663_v48 = vmax.f32 %v613_v41, 0.0 }
 0x2bc   :  { %v666_v47 = vmax.f32 %v624_v43, 0.0 }
 0x2bd   :  { %v664_v49 = vmax.f32 %v616_v45, 0.0 }
 0x2be   :  { %v3549_v50 = vpack.c.bf16 %v666_v47, %v665_v46  ;;  %2867 = vmatpush3.bf16.msra.mxu1 %v3542_v36  ;;  %v3243_v47 = vld [vmem:[%s4016_s5 + $0x68] sm:$0xff]  }
 0x2bf   :  { %v3552_v51 = vpack.c.bf16 %v664_v49, %v663_v48  ;;  %v2858_v52 = vpop.f32.mrb[24].mxu0  ;;  %v3244_v48 = vld [vmem:[%s4016_s5 + $0x70] sm:$0xff]   ;;  %v3245_v49 = vld [vmem:[%s4016_s5 + $0x78] sm:$0xff]  }
 0x2c0   :  { %v637_v53 = vadd.f32 %v2858_v52, %v2399_v23  ;;  %v628_v54 = vpop.f32.mrb[25].mxu0  ;;  %v3632_v52 = vld [vmem:[%s4017_s8 + $0x4] ss:$0 sm:$0xff] }
 0x2c1   :  { %v629_v55 = vadd.f32 %v2399_v23, %v628_v54  ;;  %v2859_v57 = vpop.f32.mrb[26].mxu0  ;;  %2868 = vmatprep.subr.bf16.mxu1 %v3552_v51 }
 0x2c2   :  { %v640_v59 = vadd.f32 %v2859_v57, %v2399_v23  ;;  %v631_v60 = vpop.f32.mrb[27].mxu0  ;;  %2869 = vmatpush3.bf16.msra.mxu1 %v3552_v51  ;;  %v669_v62 = vmax.f32 %v637_v53, 0.0 }
 0x2c3   :  { %v632_v61 = vadd.f32 %v2399_v23, %v631_v60  ;;  %2870 = vmatprep.subr.bf16.mxu1 %v3549_v50  ;;  %v667_v0 = vmax.f32 %v629_v55, 0.0 }
 0x2c4   :  { %v670_v63 = vmax.f32 %v640_v59, 0.0 }
 0x2c5   :  { %v668_v1 = vmax.f32 %v632_v61, 0.0 }
 0x2c6   :  { %v3557_v2 = vpack.c.bf16 %v670_v63, %v669_v62  ;;  %2871 = vmatpush3.bf16.msra.mxu1 %v3549_v50 }
 0x2c7   :  { %v3560_v3 = vpack.c.bf16 %v668_v1, %v667_v0  ;;  %v2862_v4 = vpop.f32.mrb[28].mxu0 }
 0x2c8   :  { %v653_v5 = vadd.f32 %v2862_v4, %v2399_v23  ;;  %v644_v6 = vpop.f32.mrb[29].mxu0 }
 0x2c9   :  { %v645_v7 = vadd.f32 %v2399_v23, %v644_v6  ;;  %v2863_v8 = vpop.f32.mrb[30].mxu0  ;;  %2872 = vmatprep.subr.bf16.mxu1 %v3560_v3 }
 0x2ca   :  { %v656_v9 = vadd.f32 %v2863_v8, %v2399_v23  ;;  %v647_v10 = vpop.f32.mrb[31].mxu0  ;;  %2873 = vmatpush3.bf16.msra.mxu1 %v3560_v3  ;;  %v673_v56 = vmax.f32 %v653_v5, 0.0 }
 0x2cb   :  { %v648_v11 = vadd.f32 %v2399_v23, %v647_v10  ;;  %2874 = vmatprep.subr.bf16.mxu1 %v3557_v2  ;;  %v671_v12 = vmax.f32 %v645_v7, 0.0  ;;  %v3237_v23 = vld [vmem:[%s4018_s4 + $0x38] sm:$0xff]  }
 0x2cc   :  { %v674_v58 = vmax.f32 %v656_v9, 0.0  ;;  %2910 = vmatprep.subr.bf16.mxu0 %v3237_v23 }
 0x2cd   :  { %v672_v13 = vmax.f32 %v648_v11, 0.0  ;;  %2911 = vmatpush3.bf16.msra.mxu0 %v3237_v23 }
 0x2ce   :  { %v3565_v16 = vpack.c.bf16 %v674_v58, %v673_v56  ;;  %2875 = vmatpush3.bf16.msra.mxu1 %v3557_v2  ;;  %2960 = vmatprep.subr.bf16.mxu0 %v3303_v24 }
 0x2cf   :  { %v3568_v17 = vpack.c.bf16 %v672_v13, %v671_v12 }
 0x2d1   :  { %2876 = vmatprep.subr.bf16.mxu1 %v3568_v17 }
 0x2d2   :  { %2877 = vmatpush3.bf16.msra.mxu1 %v3568_v17 }
 0x2d3   :  { %2878 = vmatprep.subr.bf16.mxu1 %v3565_v16 }
 0x2d6   :  { %2879 = vmatpush3.bf16.msra.mxu1 %v3565_v16 }
 0x2d9   :  { %2881 = vmatmul.mubr.bf16.vlgmr.msra.gmra.mrb[16].mxu1 %v3403_v14  ;;  %v3238_v14 = vld [vmem:[%s4016_s5 + $0x40] sm:$0xff]  }
 0x2da   :  { %2884 = vmatprep.mubr.bf16.mxu1 %v3408_v15  ;;  %v3239_v15 = vld [vmem:[%s4016_s5 + $0x48] sm:$0xff]   ;;  %2928 = vmatprep.subr.bf16.mxu1 %v3238_v14 }
 0x2db   :  { %2929 = vmatpush3.bf16.msra.mxu1 %v3238_v14 }
 0x2dc   :  { %2930 = vmatprep.subr.bf16.mxu1 %v3239_v15 }
 0x2df   :  { %2931 = vmatpush3.bf16.msra.mxu1 %v3239_v15 }
 0x2e1   :  { %2885 = vmatmul.mubr.bf16.gmra.mrb[20].mxu1 %v3421_v18  ;;  %v3240_v18 = vld [vmem:[%s4016_s5 + $0x50] sm:$0xff]  }
 0x2e2   :  { %2888 = vmatprep.mubr.bf16.mxu1 %v3426_v19  ;;  %2932 = vmatprep.subr.bf16.mxu1 %v3240_v18  ;;  %v3241_v19 = vld [vmem:[%s4016_s5 + $0x58] sm:$0xff]  }
 0x2e3   :  { %2933 = vmatpush3.bf16.msra.mxu1 %v3240_v18 }
 0x2e4   :  { %2934 = vmatprep.subr.bf16.mxu1 %v3241_v19 }
 0x2e7   :  { %2935 = vmatpush3.bf16.msra.mxu1 %v3241_v19 }
 0x2e9   :  { %2889 = vmatmul.mubr.bf16.gmra.mrb[24].mxu1 %v3433_v20  ;;  %v3242_v20 = vld [vmem:[%s4016_s5 + $0x60] sm:$0xff]  }
 0x2ea   :  { %2892 = vmatprep.mubr.bf16.mxu1 %v3438_v21  ;;  %2936 = vmatprep.subr.bf16.mxu1 %v3242_v20 }
 0x2eb   :  { %2937 = vmatpush3.bf16.msra.mxu1 %v3242_v20 }
 0x2ec   :  { %2938 = vmatprep.subr.bf16.mxu1 %v3243_v47 }
 0x2ef   :  { %2939 = vmatpush3.bf16.msra.mxu1 %v3243_v47 }
 0x2f0   :  { %2940 = vmatprep.subr.bf16.mxu1 %v3244_v48 }
 0x2f1   :  { %2893 = vmatmul.mubr.bf16.gmra.mrb[28].mxu1 %v3445_v22 }
 0x2f3   :  { %2941 = vmatpush3.bf16.msra.mxu1 %v3244_v48 }
 0x2f4   :  { %2942 = vmatprep.subr.bf16.mxu1 %v3245_v49 }
 0x2f7   :  { %2943 = vmatpush3.bf16.msra.mxu1 %v3245_v49 }
 0x3ac   :  { %v2882_v21 = vpop.f32.mrb[16].mxu1 }
 0x3ad   :  { %v733_v22 = vpop.f32.mrb[17].mxu1 }
 0x3ae   :  { %v2883_v25 = vpop.f32.mrb[18].mxu1 }
 0x3af   :  { %v797_v26 = vpack.c.bf16 %v2883_v25, %v2882_v21  ;;  %v736_v27 = vpop.f32.mrb[19].mxu1 }
 0x3b0   :  { %v796_v28 = vpack.c.bf16 %v736_v27, %v733_v22 }
 0x3b2   :  { %2912 = vmatprep.mubr.bf16.mxu0 %v796_v28 }
 0x3b3   :  { %2913 = vmatmul.mubr.bf16.vlgmr.msra.gmra.mrb[32].mxu0 %v797_v26 }
 0x3b4   :  { %2961 = vmatpush3.bf16.msra.mxu0 %v3544_v37  ;;  %v2886_v29 = vpop.f32.mrb[20].mxu1 }
 0x3b5   :  { %v749_v30 = vpop.f32.mrb[21].mxu1  ;;  %2962 = vmatprep.subr.bf16.mxu0 %v3303_v24 }
 0x3b6   :  { %v2887_v31 = vpop.f32.mrb[22].mxu1 }
 0x3b7   :  { %v799_v32 = vpack.c.bf16 %v2887_v31, %v2886_v29  ;;  %v752_v33 = vpop.f32.mrb[23].mxu1 }
 0x3b8   :  { %v798_v34 = vpack.c.bf16 %v752_v33, %v749_v30  ;;  %2963 = vmatpush3.bf16.msra.mxu0 %v3542_v36 }
 0x3b9   :  { %2964 = vmatprep.subr.bf16.mxu0 %v3303_v24 }
 0x3ba   :  { %2916 = vmatprep.mubr.bf16.mxu0 %v798_v34 }
 0x3bb   :  { %2917 = vmatmul.mubr.bf16.gmra.mrb[36].mxu0 %v799_v32 }
 0x3bc   :  { %2965 = vmatpush3.bf16.msra.mxu0 %v3552_v51  ;;  %v2890_v35 = vpop.f32.mrb[24].mxu1 }
 0x3bd   :  { %v765_v38 = vpop.f32.mrb[25].mxu1  ;;  %2966 = vmatprep.subr.bf16.mxu0 %v3303_v24 }
 0x3be   :  { %v2891_v37 = vpop.f32.mrb[26].mxu1 }
 0x3bf   :  { %v801_v39 = vpack.c.bf16 %v2891_v37, %v2890_v35  ;;  %v768_v40 = vpop.f32.mrb[27].mxu1 }
 0x3c0   :  { %v800_v41 = vpack.c.bf16 %v768_v40, %v765_v38  ;;  %2967 = vmatpush3.bf16.msra.mxu0 %v3549_v50  ;;  %v3627_v50 = vld [vmem:[%s4017_s8 + $0x3] ss:$0 sm:$0xff] }
 0x3c1   :  { %2968 = vmatprep.subr.bf16.mxu0 %v3303_v24 }
 0x3c2   :  { %2920 = vmatprep.mubr.bf16.mxu0 %v800_v41 }
 0x3c3   :  { %2921 = vmatmul.mubr.bf16.gmra.mrb[40].mxu0 %v801_v39 }
 0x3c4   :  { %2969 = vmatpush3.bf16.msra.mxu0 %v3560_v3  ;;  %v2894_v36 = vpop.f32.mrb[28].mxu1 }
 0x3c5   :  { %v781_v42 = vpop.f32.mrb[29].mxu1  ;;  %2970 = vmatprep.subr.bf16.mxu0 %v3303_v24 }
 0x3c6   :  { %v2895_v43 = vpop.f32.mrb[30].mxu1 }
 0x3c7   :  { %v803_v44 = vpack.c.bf16 %v2895_v43, %v2894_v36  ;;  %v784_v45 = vpop.f32.mrb[31].mxu1 }
 0x3c8   :  { %v802_v46 = vpack.c.bf16 %v784_v45, %v781_v42  ;;  %2971 = vmatpush3.bf16.msra.mxu0 %v3557_v2 }
 0x3c9   :  { %2972 = vmatprep.subr.bf16.mxu0 %v3303_v24 }
 0x3ca   :  { %2924 = vmatprep.mubr.bf16.mxu0 %v802_v46 }
 0x3cb   :  { %2925 = vmatmul.mubr.bf16.gmra.mrb[44].mxu0 %v803_v44 }
 0x3cc   :  { %2973 = vmatpush3.bf16.msra.mxu0 %v3568_v17  ;;  %2976 = vmatprep.mubr.msk.bf16.mxu0 %vm3304_vm0, %v3303_v24 }
 0x3cd   :  { %2974 = vmatprep.subr.bf16.mxu0 %v3303_v24 }
 0x3d0   :  { %2975 = vmatpush3.bf16.msra.mxu0 %v3565_v16 }
 0x486   :  { %v2914_v51 = vpop.f32.mrb[32].mxu0 }
 0x487   :  { %v974_v53 = vmul.f32 %v2914_v51, %v3627_v50  ;;  %v902_v54 = vpop.f32.mrb[33].mxu0 }
 0x488   :  { %v972_v55 = vmul.f32 %v3627_v50, %v902_v54  ;;  %v2915_v57 = vpop.f32.mrb[34].mxu0 }
 0x489   :  { %v994_v59 = vadd.f32 %v3632_v52, %v974_v53  ;;  %v975_v60 = vmul.f32 %v2915_v57, %v3627_v50  ;;  %v905_v61 = vpop.f32.mrb[35].mxu0 }
 0x48a   :  { %v992_v62 = vadd.f32 %v3632_v52, %v972_v55  ;;  %v973_v63 = vmul.f32 %v3627_v50, %v905_v61 }
 0x48b   :  { %v995_v0 = vadd.f32 %v3632_v52, %v975_v60  ;;  %v1010_v2 = vmax.f32 %v994_v59, 0.0 }
 0x48c   :  { %v993_v1 = vadd.f32 %v3632_v52, %v973_v63  ;;  %v1008_v4 = vmax.f32 %v992_v62, 0.0 }
 0x48d   :  { %v1011_v3 = vmax.f32 %v995_v0, 0.0 }
 0x48e   :  { %v1009_v5 = vmax.f32 %v993_v1, 0.0  ;;  %v2918_v6 = vpop.f32.mrb[36].mxu0  ;;  %v3295_v1 = vld [vmem:[%s4014_s0] sm:$0xff]  }
 0x48f   :  { %v1025_v7 = vpack.c.bf16 %v1011_v3, %v1010_v2  ;;  %v978_v8 = vmul.f32 %v2918_v6, %v3627_v50  ;;  %v918_v9 = vpop.f32.mrb[37].mxu0  ;;  %v3680_v2 = vld [vmem:[%s4019_s2] sm:$0xff]   ;;  %v3249_v3 = vld [vmem:[%s4018_s4 + $0x50] sm:$0xff]   ;;  %v3252_v6 = vld [vmem:[%s4018_s4 + $0x68] sm:$0xff]  }
 0x490   :  { %v976_v10 = vmul.f32 %v3627_v50, %v918_v9  ;;  %v2919_v11 = vpop.f32.mrb[38].mxu0  ;;  %v1024_v56 = vpack.c.bf16 %v1009_v5, %v1008_v4  ;;  %2977 = vmatmul.mubr.bf16.vlgmr.msra.gmra.mrb[48].mxu0 %v3680_v2  ;;  %v3250_v4 = vld [vmem:[%s4018_s4 + $0x58] sm:$0xff]   ;;  %v3251_v5 = vld [vmem:[%s4018_s4 + $0x60] sm:$0xff]  }
 0x491   :  { %v998_v58 = vadd.f32 %v3632_v52, %v978_v8  ;;  %v979_v12 = vmul.f32 %v2919_v11, %v3627_v50  ;;  %v921_v13 = vpop.f32.mrb[39].mxu0  ;;  %v2434_v8 = vld [vmem:[%s4017_s8 + $0x5] ss:$0 sm:$0xff] }
 0x492   :  { %v996_v16 = vadd.f32 %v3632_v52, %v976_v10  ;;  %v977_v17 = vmul.f32 %v3627_v50, %v921_v13  ;;  %2944 = vmatprep.mubr.bf16.mxu1 %v1024_v56 }
 0x493   :  { %v999_v23 = vadd.f32 %v3632_v52, %v979_v12  ;;  %2945 = vmatmul.mubr.bf16.vlgmr.msra.gmra.mrb[32].mxu1 %v1025_v7  ;;  %v1014_v15 = vmax.f32 %v998_v58, 0.0  ;;  %v3253_v7 = vld [vmem:[%s4018_s4 + $0x70] sm:$0xff]  }
 0x494   :  { %v997_v14 = vadd.f32 %v3632_v52, %v977_v17  ;;  %v1012_v19 = vmax.f32 %v996_v16, 0.0 }
 0x495   :  { %v1015_v18 = vmax.f32 %v999_v23, 0.0 }
 0x496   :  { %v1013_v20 = vmax.f32 %v997_v14, 0.0  ;;  %v2922_v21 = vpop.f32.mrb[40].mxu0 }
 0x497   :  { %v982_v22 = vmul.f32 %v2922_v21, %v3627_v50  ;;  %v934_v25 = vpop.f32.mrb[41].mxu0  ;;  %v1027_v26 = vpack.c.bf16 %v1015_v18, %v1014_v15 }
 0x498   :  { %v980_v27 = vmul.f32 %v3627_v50, %v934_v25  ;;  %v2923_v28 = vpop.f32.mrb[42].mxu0  ;;  %v1026_v29 = vpack.c.bf16 %v1013_v20, %v1012_v19 }
 0x499   :  { %v1002_v30 = vadd.f32 %v3632_v52, %v982_v22  ;;  %v983_v31 = vmul.f32 %v2923_v28, %v3627_v50  ;;  %v937_v32 = vpop.f32.mrb[43].mxu0 }
 0x49a   :  { %v1000_v33 = vadd.f32 %v3632_v52, %v980_v27  ;;  %v981_v34 = vmul.f32 %v3627_v50, %v937_v32  ;;  %2948 = vmatprep.mubr.bf16.mxu1 %v1026_v29 }
 0x49b   :  { %v1003_v35 = vadd.f32 %v3632_v52, %v983_v31  ;;  %2949 = vmatmul.mubr.bf16.gmra.mrb[36].mxu1 %v1027_v26  ;;  %v1018_v37 = vmax.f32 %v1002_v30, 0.0 }
 0x49c   :  { %v1001_v38 = vadd.f32 %v3632_v52, %v981_v34  ;;  %v1016_v40 = vmax.f32 %v1000_v33, 0.0 }
 0x49d   :  { %v1019_v39 = vmax.f32 %v1003_v35, 0.0 }
 0x49e   :  { %v1017_v41 = vmax.f32 %v1001_v38, 0.0  ;;  %v2926_v36 = vpop.f32.mrb[44].mxu0 }
 0x49f   :  { %v986_v42 = vmul.f32 %v2926_v36, %v3627_v50  ;;  %v950_v43 = vpop.f32.mrb[45].mxu0  ;;  %v1029_v44 = vpack.c.bf16 %v1019_v39, %v1018_v37 }
 0x4a0   :  { %v984_v45 = vmul.f32 %v3627_v50, %v950_v43  ;;  %v2927_v46 = vpop.f32.mrb[46].mxu0  ;;  %v1028_v47 = vpack.c.bf16 %v1017_v41, %v1016_v40 }
 0x4a1   :  { %v1006_v48 = vadd.f32 %v3632_v52, %v986_v42  ;;  %v987_v49 = vmul.f32 %v2927_v46, %v3627_v50  ;;  %v953_v51 = vpop.f32.mrb[47].mxu0 }
 0x4a2   :  { %v1004_v53 = vadd.f32 %v3632_v52, %v984_v45  ;;  %v985_v54 = vmul.f32 %v3627_v50, %v953_v51  ;;  %2952 = vmatprep.mubr.bf16.mxu1 %v1028_v47  ;;  %v3247_v50 = vld [vmem:[%s4018_s4 + $0x40] sm:$0xff]  }
 0x4a3   :  { %v1007_v55 = vadd.f32 %v3632_v52, %v987_v49  ;;  %2953 = vmatmul.mubr.bf16.gmra.mrb[40].mxu1 %v1029_v44  ;;  %v1022_v59 = vmax.f32 %v1006_v48, 0.0  ;;  %3012 = vmatprep.subr.bf16.mxu0 %v3247_v50 }
 0x4a4   :  { %v1005_v57 = vadd.f32 %v3632_v52, %v985_v54  ;;  %v1020_v61 = vmax.f32 %v1004_v53, 0.0  ;;  %v3248_v52 = vld [vmem:[%s4018_s4 + $0x48] sm:$0xff]   ;;  %3013 = vmatpush3.bf16.msra.mxu0 %v3247_v50 }
 0x4a5   :  { %v1023_v60 = vmax.f32 %v1007_v55, 0.0  ;;  %3014 = vmatprep.subr.bf16.mxu0 %v3248_v52 }
 0x4a6   :  { %v1021_v62 = vmax.f32 %v1005_v57, 0.0 }
 0x4a7   :  { %v1031_v63 = vpack.c.bf16 %v1023_v60, %v1022_v59 }
 0x4a8   :  { %v1030_v0 = vpack.c.bf16 %v1021_v62, %v1020_v61  ;;  %3015 = vmatpush3.bf16.msra.mxu0 %v3248_v52 }
 0x4a9   :  { %3016 = vmatprep.subr.bf16.mxu0 %v3249_v3 }
 0x4aa   :  { %2956 = vmatprep.mubr.bf16.mxu1 %v1030_v0 }
 0x4ab   :  { %2957 = vmatmul.mubr.bf16.gmra.mrb[44].mxu1 %v1031_v63 }
 0x4ac   :  { %2996 = vmatprep.mubr.bf16.mxu1 %v3295_v1  ;;  %3017 = vmatpush3.bf16.msra.mxu0 %v3249_v3  ;;  %v3296_v3 = vld [vmem:[%s4014_s0 + $0x8] sm:$0xff]  }
 0x4ad   :  { %3018 = vmatprep.subr.bf16.mxu0 %v3250_v4 }
 0x4b0   :  { %3019 = vmatpush3.bf16.msra.mxu0 %v3250_v4  ;;  %v3297_v4 = vld [vmem:[%s4014_s0 + $0x10] sm:$0xff]  }
 0x4b1   :  { %3020 = vmatprep.subr.bf16.mxu0 %v3251_v5 }
 0x4b4   :  { %3021 = vmatpush3.bf16.msra.mxu0 %v3251_v5  ;;  %v3298_v5 = vld [vmem:[%s4014_s0 + $0x18] sm:$0xff]  }
 0x4b5   :  { %3022 = vmatprep.subr.bf16.mxu0 %v3252_v6 }
 0x4b8   :  { %3023 = vmatpush3.bf16.msra.mxu0 %v3252_v6  ;;  %v3299_v6 = vld [vmem:[%s4014_s0 + $0x20] sm:$0xff]  }
 0x4b9   :  { %3024 = vmatprep.subr.bf16.mxu0 %v3253_v7 }
 0x4bc   :  { %3025 = vmatpush3.bf16.msra.mxu0 %v3253_v7  ;;  %v3300_v7 = vld [vmem:[%s4014_s0 + $0x28] sm:$0xff]  }
 0x566   :  { %v2946_v9 = vpop.f32.mrb[32].mxu1 }
 0x567   :  { %v1144_v10 = vadd.f32 %v2946_v9, %v2434_v8  ;;  %v1135_v11 = vpop.f32.mrb[33].mxu1  ;;  %v3302_v9 = vld [vmem:[%s4014_s0 + $0x38] sm:$0xff]  }
 0x568   :  { %v1136_v56 = vadd.f32 %v2434_v8, %v1135_v11  ;;  %v2947_v58 = vpop.f32.mrb[34].mxu1  ;;  %v3758_v11 = vpop.f32.mrb[48].mxu0 }
 0x569   :  { %v1147_v12 = vadd.f32 %v2947_v58, %v2434_v8  ;;  %v1138_v13 = vpop.f32.mrb[35].mxu1  ;;  %v1200_v17 = vmax.f32 %v1144_v10, 0.0  ;;  %v3254_v10 = vld [vmem:[%s4018_s4 + $0x78] sm:$0xff]   ;;  %v3256_v58 = vld [vmem:[%s4016_s5 + $0x88] sm:$0xff]  }
 0x56a   :  { %v1139_v16 = vadd.f32 %v2434_v8, %v1138_v13  ;;  %v1198_v14 = vmax.f32 %v1136_v56, 0.0  ;;  %3026 = vmatprep.subr.bf16.mxu0 %v3254_v10  ;;  %v3255_v56 = vld [vmem:[%s4016_s5 + $0x80] sm:$0xff]  }
 0x56b   :  { %v1201_v23 = vmax.f32 %v1147_v12, 0.0  ;;  %3027 = vmatpush3.bf16.msra.mxu0 %v3254_v10  ;;  %v2978_v12 = vpop.f32.mrb[49].mxu0 }
 0x56c   :  { %v1199_v15 = vmax.f32 %v1139_v16, 0.0  ;;  %3076 = vmatprep.subr.bf16.mxu0 %v3303_v24  ;;  %v3766_v13 = vpop.f32.mrb[50].mxu0 }
 0x56d   :  { %v3701_v18 = vpack.c.bf16 %v1201_v23, %v1200_v17  ;;  %v1927_v16 = vpack.c.bf16 %v3766_v13, %v3758_v11  ;;  %v2979_v17 = vpop.f32.mrb[51].mxu0  ;;  %v3257_v23 = vld [vmem:[%s4016_s5 + $0x90] sm:$0xff]   ;;  %v3288_v11 = vld [vmem:[%s4021_s7 + $0x8] sm:$0xff]  }
 0x56e   :  { %v3703_v19 = vpack.c.bf16 %v1199_v15, %v1198_v14  ;;  %v2950_v20 = vpop.f32.mrb[36].mxu1  ;;  %v3258_v14 = vld [vmem:[%s4016_s5 + $0x98] sm:$0xff]   ;;  %v3259_v15 = vld [vmem:[%s4016_s5 + $0xa0] sm:$0xff]   ;;  %v3289_v13 = vld [vmem:[%s4021_s7 + $0x10] sm:$0xff]  }
 0x56f   :  { %v1160_v21 = vadd.f32 %v2950_v20, %v2434_v8  ;;  %v1151_v22 = vpop.f32.mrb[37].mxu1 }
 0x570   :  { %v1152_v25 = vadd.f32 %v2434_v8, %v1151_v22  ;;  %v2951_v26 = vpop.f32.mrb[38].mxu1  ;;  %2980 = vmatprep.subr.bf16.mxu1 %v3703_v19 }
 0x571   :  { %v1163_v27 = vadd.f32 %v2951_v26, %v2434_v8  ;;  %v1154_v28 = vpop.f32.mrb[39].mxu1  ;;  %2981 = vmatpush3.bf16.msra.mxu1 %v3703_v19  ;;  %v1204_v30 = vmax.f32 %v1160_v21, 0.0 }
 0x572   :  { %v1155_v29 = vadd.f32 %v2434_v8, %v1154_v28  ;;  %2982 = vmatprep.subr.bf16.mxu1 %v3701_v18  ;;  %v1202_v32 = vmax.f32 %v1152_v25, 0.0 }
 0x573   :  { %v1205_v31 = vmax.f32 %v1163_v27, 0.0 }
 0x574   :  { %v1203_v33 = vmax.f32 %v1155_v29, 0.0 }
 0x575   :  { %v3708_v34 = vpack.c.bf16 %v1205_v31, %v1204_v30  ;;  %2983 = vmatpush3.bf16.msra.mxu1 %v3701_v18 }
 0x576   :  { %v3711_v35 = vpack.c.bf16 %v1203_v33, %v1202_v32  ;;  %v2954_v38 = vpop.f32.mrb[40].mxu1 }
 0x577   :  { %v1176_v37 = vadd.f32 %v2954_v38, %v2434_v8  ;;  %v1167_v39 = vpop.f32.mrb[41].mxu1 }
 0x578   :  { %v1168_v40 = vadd.f32 %v2434_v8, %v1167_v39  ;;  %v2955_v41 = vpop.f32.mrb[42].mxu1  ;;  %2984 = vmatprep.subr.bf16.mxu1 %v3711_v35 }
 0x579   :  { %v1179_v36 = vadd.f32 %v2955_v41, %v2434_v8  ;;  %v1170_v42 = vpop.f32.mrb[43].mxu1  ;;  %2985 = vmatpush3.bf16.msra.mxu1 %v3711_v35  ;;  %v1208_v44 = vmax.f32 %v1176_v37, 0.0 }
 0x57a   :  { %v1171_v43 = vadd.f32 %v2434_v8, %v1170_v42  ;;  %2986 = vmatprep.subr.bf16.mxu1 %v3708_v34  ;;  %v1206_v46 = vmax.f32 %v1168_v40, 0.0 }
 0x57b   :  { %v1209_v45 = vmax.f32 %v1179_v36, 0.0 }
 0x57c   :  { %v1207_v47 = vmax.f32 %v1171_v43, 0.0 }
 0x57d   :  { %v3716_v48 = vpack.c.bf16 %v1209_v45, %v1208_v44  ;;  %2987 = vmatpush3.bf16.msra.mxu1 %v3708_v34  ;;  %v3261_v45 = vld [vmem:[%s4016_s5 + $0xb0] sm:$0xff]  }
 0x57e   :  { %v3719_v49 = vpack.c.bf16 %v1207_v47, %v1206_v46  ;;  %v2958_v51 = vpop.f32.mrb[44].mxu1  ;;  %v3262_v46 = vld [vmem:[%s4016_s5 + $0xb8] sm:$0xff]   ;;  %v3813_v47 = vld [vmem:[%s4017_s8 + $0x6] ss:$0 sm:$0xff] }
 0x57f   :  { %v1192_v53 = vadd.f32 %v2958_v51, %v2434_v8  ;;  %v1183_v54 = vpop.f32.mrb[45].mxu1 }
 0x580   :  { %v1184_v55 = vadd.f32 %v2434_v8, %v1183_v54  ;;  %v2959_v57 = vpop.f32.mrb[46].mxu1  ;;  %2988 = vmatprep.subr.bf16.mxu1 %v3719_v49 }
 0x581   :  { %v1195_v59 = vadd.f32 %v2959_v57, %v2434_v8  ;;  %v1186_v60 = vpop.f32.mrb[47].mxu1  ;;  %2989 = vmatpush3.bf16.msra.mxu1 %v3719_v49  ;;  %v1212_v62 = vmax.f32 %v1192_v53, 0.0 }
 0x582   :  { %v1187_v61 = vadd.f32 %v2434_v8, %v1186_v60  ;;  %2990 = vmatprep.subr.bf16.mxu1 %v3716_v48  ;;  %v1210_v0 = vmax.f32 %v1184_v55, 0.0  ;;  %v3301_v8 = vld [vmem:[%s4014_s0 + $0x30] sm:$0xff]  }
 0x583   :  { %v1213_v63 = vmax.f32 %v1195_v59, 0.0 }
 0x584   :  { %v1211_v1 = vmax.f32 %v1187_v61, 0.0 }
 0x585   :  { %v3724_v50 = vpack.c.bf16 %v1213_v63, %v1212_v62  ;;  %2991 = vmatpush3.bf16.msra.mxu1 %v3716_v48 }
 0x586   :  { %v3727_v52 = vpack.c.bf16 %v1211_v1, %v1210_v0 }
 0x588   :  { %2992 = vmatprep.subr.bf16.mxu1 %v3727_v52 }
 0x589   :  { %2993 = vmatpush3.bf16.msra.mxu1 %v3727_v52 }
 0x58a   :  { %2994 = vmatprep.subr.bf16.mxu1 %v3724_v50 }
 0x58d   :  { %2995 = vmatpush3.bf16.msra.mxu1 %v3724_v50 }
 0x58e   :  { %3044 = vmatprep.subr.bf16.mxu1 %v3255_v56 }
 0x590   :  { %2997 = vmatmul.mubr.bf16.vlgmr.msra.gmra.mrb[48].mxu1 %v3296_v3 }
 0x591   :  { %3000 = vmatprep.mubr.bf16.mxu1 %v3297_v4  ;;  %3045 = vmatpush3.bf16.msra.mxu1 %v3255_v56 }
 0x592   :  { %3046 = vmatprep.subr.bf16.mxu1 %v3256_v58 }
 0x595   :  { %3047 = vmatpush3.bf16.msra.mxu1 %v3256_v58 }
 0x596   :  { %3048 = vmatprep.subr.bf16.mxu1 %v3257_v23 }
 0x598   :  { %3001 = vmatmul.mubr.bf16.gmra.mrb[52].mxu1 %v3298_v5 }
 0x599   :  { %3004 = vmatprep.mubr.bf16.mxu1 %v3299_v6  ;;  %3049 = vmatpush3.bf16.msra.mxu1 %v3257_v23 }
 0x59a   :  { %3050 = vmatprep.subr.bf16.mxu1 %v3258_v14 }
 0x59d   :  { %3051 = vmatpush3.bf16.msra.mxu1 %v3258_v14 }
 0x59e   :  { %3052 = vmatprep.subr.bf16.mxu1 %v3259_v15 }
 0x5a0   :  { %3005 = vmatmul.mubr.bf16.gmra.mrb[56].mxu1 %v3300_v7 }
 0x5a1   :  { %3008 = vmatprep.mubr.bf16.mxu1 %v3301_v8  ;;  %3053 = vmatpush3.bf16.msra.mxu1 %v3259_v15 }
 0x5a8   :  { %3009 = vmatmul.mubr.bf16.gmra.mrb[60].mxu1 %v3302_v9 }
 0x663   :  { %v2998_v20 = vpop.f32.mrb[48].mxu1 }
 0x664   :  { %v1329_v21 = vpop.f32.mrb[49].mxu1 }
 0x665   :  { %v2999_v22 = vpop.f32.mrb[50].mxu1 }
 0x666   :  { %v1393_v25 = vpack.c.bf16 %v2999_v22, %v2998_v20  ;;  %v1332_v26 = vpop.f32.mrb[51].mxu1 }
 0x667   :  { %v1392_v27 = vpack.c.bf16 %v1332_v26, %v1329_v21 }
 0x669   :  { %3028 = vmatprep.mubr.bf16.mxu0 %v1392_v27 }
 0x66a   :  { %3029 = vmatmul.mubr.bf16.vlgmr.msra.gmra.mrb[52].mxu0 %v1393_v25 }
 0x66b   :  { %3077 = vmatpush3.bf16.msra.mxu0 %v3703_v19  ;;  %v3002_v28 = vpop.f32.mrb[52].mxu1 }
 0x66c   :  { %v1345_v29 = vpop.f32.mrb[53].mxu1  ;;  %3078 = vmatprep.subr.bf16.mxu0 %v3303_v24 }
 0x66d   :  { %v3003_v30 = vpop.f32.mrb[54].mxu1 }
 0x66e   :  { %v1395_v31 = vpack.c.bf16 %v3003_v30, %v3002_v28  ;;  %v1348_v32 = vpop.f32.mrb[55].mxu1 }
 0x66f   :  { %v1394_v33 = vpack.c.bf16 %v1348_v32, %v1345_v29  ;;  %3079 = vmatpush3.bf16.msra.mxu0 %v3701_v18 }
 0x670   :  { %3080 = vmatprep.subr.bf16.mxu0 %v3303_v24 }
 0x671   :  { %3032 = vmatprep.mubr.bf16.mxu0 %v1394_v33 }
 0x672   :  { %3033 = vmatmul.mubr.bf16.gmra.mrb[56].mxu0 %v1395_v31 }
 0x673   :  { %3081 = vmatpush3.bf16.msra.mxu0 %v3711_v35  ;;  %v3006_v38 = vpop.f32.mrb[56].mxu1 }
 0x674   :  { %v1361_v37 = vpop.f32.mrb[57].mxu1  ;;  %3082 = vmatprep.subr.bf16.mxu0 %v3303_v24 }
 0x675   :  { %v3007_v19 = vpop.f32.mrb[58].mxu1 }
 0x676   :  { %v1397_v39 = vpack.c.bf16 %v3007_v19, %v3006_v38  ;;  %v1364_v40 = vpop.f32.mrb[59].mxu1 }
 0x677   :  { %v1396_v41 = vpack.c.bf16 %v1364_v40, %v1361_v37  ;;  %3083 = vmatpush3.bf16.msra.mxu0 %v3708_v34  ;;  %v3260_v34 = vld [vmem:[%s4016_s5 + $0xa8] sm:$0xff]  }
 0x678   :  { %3084 = vmatprep.subr.bf16.mxu0 %v3303_v24  ;;  %3054 = vmatprep.subr.bf16.mxu1 %v3260_v34 }
 0x679   :  { %3036 = vmatprep.mubr.bf16.mxu0 %v1396_v41  ;;  %3055 = vmatpush3.bf16.msra.mxu1 %v3260_v34 }
 0x67a   :  { %3037 = vmatmul.mubr.bf16.gmra.mrb[60].mxu0 %v1397_v39  ;;  %3056 = vmatprep.subr.bf16.mxu1 %v3261_v45 }
 0x67b   :  { %3085 = vmatpush3.bf16.msra.mxu0 %v3719_v49  ;;  %v3010_v18 = vpop.f32.mrb[60].mxu1  ;;  %v3818_v49 = vld [vmem:[%s4017_s8 + $0x7] ss:$0 sm:$0xff] }
 0x67c   :  { %v1377_v36 = vpop.f32.mrb[61].mxu1  ;;  %3086 = vmatprep.subr.bf16.mxu0 %v3303_v24 }
 0x67d   :  { %v3011_v35 = vpop.f32.mrb[62].mxu1  ;;  %3057 = vmatpush3.bf16.msra.mxu1 %v3261_v45 }
 0x67e   :  { %v1399_v42 = vpack.c.bf16 %v3011_v35, %v3010_v18  ;;  %v1380_v43 = vpop.f32.mrb[63].mxu1  ;;  %3058 = vmatprep.subr.bf16.mxu1 %v3262_v46 }
 0x67f   :  { %v1398_v44 = vpack.c.bf16 %v1380_v43, %v1377_v36  ;;  %3087 = vmatpush3.bf16.msra.mxu0 %v3716_v48 }
 0x680   :  { %3088 = vmatprep.subr.bf16.mxu0 %v3303_v24 }
 0x681   :  { %3040 = vmatprep.mubr.bf16.mxu0 %v1398_v44  ;;  %3059 = vmatpush3.bf16.msra.mxu1 %v3262_v46 }
 0x682   :  { %3041 = vmatmul.mubr.bf16.gmra.mrb[64].mxu0 %v1399_v42  ;;  %3096 = vmatprep.subr.bf16.mxu1 %v3303_v24 }
 0x683   :  { %3089 = vmatpush3.bf16.msra.mxu0 %v3727_v52  ;;  %3092 = vmatprep.mubr.msk.bf16.mxu0 %vm3304_vm0, %v3303_v24 }
 0x684   :  { %3090 = vmatprep.subr.bf16.mxu0 %v3303_v24 }
 0x687   :  { %3091 = vmatpush3.bf16.msra.mxu0 %v3724_v50 }
 0x688   :  { %3116 = vmatprep.subr.bf16.mxu0 %v3303_v24 }
 0x68a   :  { %3093 = vmatmul.mubr.bf16.vlgmr.msra.gmra.mrb[68].mxu0 %v3680_v2 }
 0x68b   :  { %3132 = vmatprep.mubr.msk.bf16.mxu0 %vm3304_vm0, %v3303_v24 }
 0x73d   :  { %v3030_v48 = vpop.f32.mrb[52].mxu0 }
 0x73e   :  { %v1571_v51 = vmul.f32 %v3030_v48, %v3813_v47  ;;  %v1499_v53 = vpop.f32.mrb[53].mxu0 }
 0x73f   :  { %v1569_v54 = vmul.f32 %v3813_v47, %v1499_v53  ;;  %v3031_v55 = vpop.f32.mrb[54].mxu0 }
 0x740   :  { %v1591_v57 = vadd.f32 %v3818_v49, %v1571_v51  ;;  %v1572_v59 = vmul.f32 %v3031_v55, %v3813_v47  ;;  %v1502_v60 = vpop.f32.mrb[55].mxu0 }
 0x741   :  { %v1589_v61 = vadd.f32 %v3818_v49, %v1569_v54  ;;  %v1570_v62 = vmul.f32 %v3813_v47, %v1502_v60 }
 0x742   :  { %v1592_v63 = vadd.f32 %v3818_v49, %v1572_v59  ;;  %v1607_v1 = vmax.f32 %v1591_v57, 0.0 }
 0x743   :  { %v1590_v0 = vadd.f32 %v3818_v49, %v1570_v62  ;;  %v1605_v52 = vmax.f32 %v1589_v61, 0.0 }
 0x744   :  { %v1608_v50 = vmax.f32 %v1592_v63, 0.0 }
 0x745   :  { %v1606_v3 = vmax.f32 %v1590_v0, 0.0  ;;  %v3034_v4 = vpop.f32.mrb[56].mxu0 }
 0x746   :  { %v1622_v5 = vpack.c.bf16 %v1608_v50, %v1607_v1  ;;  %v1575_v6 = vmul.f32 %v3034_v4, %v3813_v47  ;;  %v1515_v7 = vpop.f32.mrb[57].mxu0  ;;  %v3269_v4 = vld [vmem:[%s4020_s6 + $0x58] sm:$0xff]  }
 0x747   :  { %v1573_v8 = vmul.f32 %v3813_v47, %v1515_v7  ;;  %v3035_v9 = vpop.f32.mrb[58].mxu0  ;;  %v1621_v10 = vpack.c.bf16 %v1606_v3, %v1605_v52  ;;  %v3267_v3 = vld [vmem:[%s4020_s6 + $0x50] sm:$0xff]  }
 0x748   :  { %v1595_v56 = vadd.f32 %v3818_v49, %v1575_v6  ;;  %v1576_v58 = vmul.f32 %v3035_v9, %v3813_v47  ;;  %v1518_v12 = vpop.f32.mrb[59].mxu0  ;;  %v3273_v6 = vld [vmem:[%s4020_s6 + $0x68] sm:$0xff]   ;;  %v3275_v7 = vld [vmem:[%s4020_s6 + $0x70] sm:$0xff]  }
 0x749   :  { %v1593_v17 = vadd.f32 %v3818_v49, %v1573_v8  ;;  %v1574_v23 = vmul.f32 %v3813_v47, %v1518_v12  ;;  %3060 = vmatprep.mubr.bf16.mxu1 %v1621_v10  ;;  %v3277_v10 = vld [vmem:[%s4020_s6 + $0x78] sm:$0xff]  }
 0x74a   :  { %v1596_v14 = vadd.f32 %v3818_v49, %v1576_v58  ;;  %3061 = vmatmul.mubr.bf16.vlgmr.msra.gmra.mrb[64].mxu1 %v1622_v5  ;;  %v1611_v20 = vmax.f32 %v1595_v56, 0.0  ;;  %v3271_v5 = vld [vmem:[%s4020_s6 + $0x60] sm:$0xff]  }
 0x74b   :  { %v1594_v15 = vadd.f32 %v3818_v49, %v1574_v23  ;;  %v1609_v22 = vmax.f32 %v1593_v17, 0.0  ;;  %v3279_v17 = vld [vmem:[%s4020_s6 + $0x80] sm:$0xff]   ;;  %v3280_v23 = vld [vmem:[%s4020_s6 + $0x88] sm:$0xff]  }
 0x74c   :  { %v1612_v21 = vmax.f32 %v1596_v14, 0.0  ;;  %v3281_v14 = vld [vmem:[%s4020_s6 + $0x90] sm:$0xff]  }
 0x74d   :  { %v1610_v25 = vmax.f32 %v1594_v15, 0.0  ;;  %v3038_v26 = vpop.f32.mrb[60].mxu0  ;;  %v3282_v15 = vld [vmem:[%s4020_s6 + $0x98] sm:$0xff]  }
 0x74e   :  { %v1579_v27 = vmul.f32 %v3038_v26, %v3813_v47  ;;  %v1531_v28 = vpop.f32.mrb[61].mxu0  ;;  %v1624_v29 = vpack.c.bf16 %v1612_v21, %v1611_v20  ;;  %v3283_v20 = vld [vmem:[%s4020_s6 + $0xa0] sm:$0xff]   ;;  %v3284_v21 = vld [vmem:[%s4020_s6 + $0xa8] sm:$0xff]  }
 0x74f   :  { %v1577_v30 = vmul.f32 %v3813_v47, %v1531_v28  ;;  %v3039_v31 = vpop.f32.mrb[62].mxu0  ;;  %v1623_v32 = vpack.c.bf16 %v1610_v25, %v1609_v22  ;;  %v3285_v22 = vld [vmem:[%s4020_s6 + $0xb0] sm:$0xff]   ;;  %v2486_v25 = vld [vmem:[%s4017_s8 + $0x8] ss:$0 sm:$0xff] }
 0x750   :  { %v1599_v33 = vadd.f32 %v3818_v49, %v1579_v27  ;;  %v1580_v38 = vmul.f32 %v3039_v31, %v3813_v47  ;;  %v1534_v37 = vpop.f32.mrb[63].mxu0 }
 0x751   :  { %v1597_v19 = vadd.f32 %v3818_v49, %v1577_v30  ;;  %v1578_v39 = vmul.f32 %v3813_v47, %v1534_v37  ;;  %3064 = vmatprep.mubr.bf16.mxu1 %v1623_v32 }
 0x752   :  { %v1600_v40 = vadd.f32 %v3818_v49, %v1580_v38  ;;  %3065 = vmatmul.mubr.bf16.gmra.mrb[68].mxu1 %v1624_v29  ;;  %v1615_v18 = vmax.f32 %v1599_v33, 0.0 }
 0x753   :  { %v1598_v41 = vadd.f32 %v3818_v49, %v1578_v39  ;;  %v1613_v35 = vmax.f32 %v1597_v19, 0.0 }
 0x754   :  { %v1616_v36 = vmax.f32 %v1600_v40, 0.0 }
 0x755   :  { %v1614_v42 = vmax.f32 %v1598_v41, 0.0  ;;  %v3042_v43 = vpop.f32.mrb[64].mxu0 }
 0x756   :  { %v1583_v44 = vmul.f32 %v3042_v43, %v3813_v47  ;;  %v1547_v34 = vpop.f32.mrb[65].mxu0  ;;  %v1626_v45 = vpack.c.bf16 %v1616_v36, %v1615_v18 }
 0x757   :  { %v1581_v46 = vmul.f32 %v3813_v47, %v1547_v34  ;;  %v3043_v48 = vpop.f32.mrb[66].mxu0  ;;  %v1625_v51 = vpack.c.bf16 %v1614_v42, %v1613_v35 }
 0x758   :  { %v1603_v53 = vadd.f32 %v3818_v49, %v1583_v44  ;;  %v1584_v54 = vmul.f32 %v3043_v48, %v3813_v47  ;;  %v1550_v55 = vpop.f32.mrb[67].mxu0 }
 0x759   :  { %v1601_v57 = vadd.f32 %v3818_v49, %v1581_v46  ;;  %v1582_v59 = vmul.f32 %v3813_v47, %v1550_v55  ;;  %3068 = vmatprep.mubr.bf16.mxu1 %v1625_v51  ;;  %v3263_v47 = vld [vmem:[%s4020_s6 + $0x40] sm:$0xff]  }
 0x75a   :  { %v1604_v60 = vadd.f32 %v3818_v49, %v1584_v54  ;;  %3069 = vmatmul.mubr.bf16.gmra.mrb[72].mxu1 %v1626_v45  ;;  %v1619_v62 = vmax.f32 %v1603_v53, 0.0  ;;  %3117 = vmatpush3.bf16.msra.mxu0 %v3263_v47 }
 0x75b   :  { %v1602_v61 = vadd.f32 %v3818_v49, %v1582_v59  ;;  %v1617_v0 = vmax.f32 %v1601_v57, 0.0  ;;  %v3265_v49 = vld [vmem:[%s4020_s6 + $0x48] sm:$0xff]   ;;  %3118 = vmatprep.subr.bf16.mxu0 %v3303_v24 }
 0x75c   :  { %v1620_v63 = vmax.f32 %v1604_v60, 0.0 }
 0x75d   :  { %v1618_v1 = vmax.f32 %v1602_v61, 0.0  ;;  %v1869_v8 = vpop.f32.mrb[68].mxu0 }
 0x75e   :  { %v1628_v50 = vpack.c.bf16 %v1620_v63, %v1619_v62  ;;  %3119 = vmatpush3.bf16.msra.mxu0 %v3265_v49  ;;  %v3094_v9 = vpop.f32.mrb[69].mxu0 }
 0x75f   :  { %v1627_v52 = vpack.c.bf16 %v1618_v1, %v1617_v0  ;;  %3120 = vmatprep.subr.bf16.mxu0 %v3303_v24  ;;  %v1872_v56 = vpop.f32.mrb[70].mxu0 }
 0x760   :  { %v1944_v58 = vpack.c.bf16 %v1872_v56, %v1869_v8  ;;  %v3095_v12 = vpop.f32.mrb[71].mxu0 }
 0x761   :  { %3072 = vmatprep.mubr.bf16.mxu1 %v1627_v52 }
 0x762   :  { %3073 = vmatmul.mubr.bf16.gmra.mrb[76].mxu1 %v1628_v50  ;;  %3121 = vmatpush3.bf16.msra.mxu0 %v3267_v3 }
 0x763   :  { %3112 = vmatprep.mubr.msk.bf16.mxu1 %vm3304_vm0, %v3303_v24  ;;  %3122 = vmatprep.subr.bf16.mxu0 %v3303_v24 }
 0x766   :  { %3123 = vmatpush3.bf16.msra.mxu0 %v3269_v4 }
 0x767   :  { %3124 = vmatprep.subr.bf16.mxu0 %v3303_v24 }
 0x76a   :  { %3125 = vmatpush3.bf16.msra.mxu0 %v3271_v5 }
 0x76b   :  { %3126 = vmatprep.subr.bf16.mxu0 %v3303_v24 }
 0x76e   :  { %3127 = vmatpush3.bf16.msra.mxu0 %v3273_v6 }
 0x76f   :  { %3128 = vmatprep.subr.bf16.mxu0 %v3303_v24 }
 0x772   :  { %3129 = vmatpush3.bf16.msra.mxu0 %v3275_v7 }
 0x773   :  { %3130 = vmatprep.subr.bf16.mxu0 %v3303_v24 }
 0x776   :  { %3131 = vmatpush3.bf16.msra.mxu0 %v3277_v10 }
 0x777   :  { %3156 = vmatprep.subr.bf16.mxu0 %v3303_v24 }
 0x779   :  { %3133 = vmatmul.mubr.bf16.vlgmr.msra.gmra.mrb[72].mxu0 %v1944_v58 }
 0x77a   :  { %3157 = vmatpush3.bf16.msra.mxu0 %v3279_v17  ;;  %3172 = vmatprep.mubr.msk.bf16.mxu0 %vm3304_vm0, %v3303_v24 }
 0x77b   :  { %3158 = vmatprep.subr.bf16.mxu0 %v3303_v24 }
 0x77e   :  { %3159 = vmatpush3.bf16.msra.mxu0 %v3280_v23 }
 0x77f   :  { %3160 = vmatprep.subr.bf16.mxu0 %v3303_v24 }
 0x782   :  { %3161 = vmatpush3.bf16.msra.mxu0 %v3281_v14 }
 0x783   :  { %3162 = vmatprep.subr.bf16.mxu0 %v3303_v24 }
 0x786   :  { %3163 = vmatpush3.bf16.msra.mxu0 %v3282_v15 }
 0x787   :  { %3164 = vmatprep.subr.bf16.mxu0 %v3303_v24 }
 0x78a   :  { %3165 = vmatpush3.bf16.msra.mxu0 %v3283_v20 }
 0x78b   :  { %3166 = vmatprep.subr.bf16.mxu0 %v3303_v24 }
 0x78e   :  { %3167 = vmatpush3.bf16.msra.mxu0 %v3284_v21  ;;  %v3264_v21 = vld [vmem:[%s4020_s6] sm:$0xff]  }
 0x78f   :  { %3168 = vmatprep.subr.bf16.mxu0 %v3303_v24 }
 0x792   :  { %3169 = vmatpush3.bf16.msra.mxu0 %v3285_v22  ;;  %v3266_v22 = vld [vmem:[%s4020_s6 + $0x8] sm:$0xff]  }
 0x793   :  { %3170 = vmatprep.subr.bf16.mxu0 %v3303_v24 }
 0x81d   :  { %v3062_v26 = vpop.f32.mrb[64].mxu1 }
 0x81e   :  { %v1741_v27 = vadd.f32 %v3062_v26, %v2486_v25  ;;  %v1732_v28 = vpop.f32.mrb[65].mxu1  ;;  %v3272_v26 = vld [vmem:[%s4020_s6 + $0x20] sm:$0xff]  }
 0x81f   :  { %v1733_v29 = vadd.f32 %v2486_v25, %v1732_v28  ;;  %v3063_v30 = vpop.f32.mrb[66].mxu1  ;;  %v3276_v28 = vld [vmem:[%s4020_s6 + $0x30] sm:$0xff]  }
 0x820   :  { %v1744_v31 = vadd.f32 %v3063_v30, %v2486_v25  ;;  %v1735_v32 = vpop.f32.mrb[67].mxu1  ;;  %v1797_v38 = vmax.f32 %v1741_v27, 0.0  ;;  %v3274_v27 = vld [vmem:[%s4020_s6 + $0x28] sm:$0xff]   ;;  %v3286_v30 = vld [vmem:[%s4020_s6 + $0xb8] sm:$0xff]  }
 0x821   :  { %v1736_v33 = vadd.f32 %v2486_v25, %v1735_v32  ;;  %v1795_v19 = vmax.f32 %v1733_v29, 0.0  ;;  %v3278_v29 = vld [vmem:[%s4020_s6 + $0x38] sm:$0xff]   ;;  %3171 = vmatpush3.bf16.msra.mxu0 %v3286_v30 }
 0x822   :  { %v1798_v37 = vmax.f32 %v1744_v31, 0.0 }
 0x823   :  { %v1796_v39 = vmax.f32 %v1736_v33, 0.0 }
 0x824   :  { %v1812_v40 = vpack.c.bf16 %v1798_v37, %v1797_v38  ;;  %v3287_v37 = vld [vmem:[%s4021_s7] sm:$0xff]  }
 0x825   :  { %v1811_v41 = vpack.c.bf16 %v1796_v39, %v1795_v19  ;;  %v3066_v18 = vpop.f32.mrb[68].mxu1  ;;  %v3291_v19 = vld [vmem:[%s4021_s7 + $0x20] sm:$0xff]  }
 0x826   :  { %v1757_v36 = vadd.f32 %v3066_v18, %v2486_v25  ;;  %v1748_v35 = vpop.f32.mrb[69].mxu1 }
 0x827   :  { %v1749_v42 = vadd.f32 %v2486_v25, %v1748_v35  ;;  %v3067_v43 = vpop.f32.mrb[70].mxu1  ;;  %3097 = vmatpush3.bf16.msra.mxu1 %v1811_v41 }
 0x828   :  { %v1760_v44 = vadd.f32 %v3067_v43, %v2486_v25  ;;  %v1751_v34 = vpop.f32.mrb[71].mxu1  ;;  %3098 = vmatprep.subr.bf16.mxu1 %v3303_v24  ;;  %v1801_v46 = vmax.f32 %v1757_v36, 0.0 }
 0x829   :  { %v1752_v45 = vadd.f32 %v2486_v25, %v1751_v34  ;;  %v1799_v51 = vmax.f32 %v1749_v42, 0.0 }
 0x82a   :  { %v1802_v48 = vmax.f32 %v1760_v44, 0.0 }
 0x82b   :  { %v1800_v53 = vmax.f32 %v1752_v45, 0.0  ;;  %3099 = vmatpush3.bf16.msra.mxu1 %v1812_v40 }
 0x82c   :  { %v1814_v54 = vpack.c.bf16 %v1802_v48, %v1801_v46  ;;  %3100 = vmatprep.subr.bf16.mxu1 %v3303_v24  ;;  %v3292_v46 = vld [vmem:[%s4021_s7 + $0x28] sm:$0xff]   ;;  %v3293_v48 = vld [vmem:[%s4021_s7 + $0x30] sm:$0xff]  }
 0x82d   :  { %v1813_v55 = vpack.c.bf16 %v1800_v53, %v1799_v51  ;;  %v3070_v57 = vpop.f32.mrb[72].mxu1  ;;  %v3294_v51 = vld [vmem:[%s4021_s7 + $0x38] sm:$0xff]   ;;  %v2551_v53 = vld [vmem:[%s4017_s8 + $0x9] ss:$0 sm:$0xff] }
 0x82e   :  { %v1773_v59 = vadd.f32 %v3070_v57, %v2486_v25  ;;  %v1764_v60 = vpop.f32.mrb[73].mxu1 }
 0x82f   :  { %v1765_v61 = vadd.f32 %v2486_v25, %v1764_v60  ;;  %v3071_v62 = vpop.f32.mrb[74].mxu1  ;;  %3101 = vmatpush3.bf16.msra.mxu1 %v1813_v55 }
 0x830   :  { %v1776_v63 = vadd.f32 %v3071_v62, %v2486_v25  ;;  %v1767_v0 = vpop.f32.mrb[75].mxu1  ;;  %3102 = vmatprep.subr.bf16.mxu1 %v3303_v24  ;;  %v1805_v50 = vmax.f32 %v1773_v59, 0.0 }
 0x831   :  { %v1768_v1 = vadd.f32 %v2486_v25, %v1767_v0  ;;  %v1803_v47 = vmax.f32 %v1765_v61, 0.0 }
 0x832   :  { %v1806_v52 = vmax.f32 %v1776_v63, 0.0 }
 0x833   :  { %v1804_v49 = vmax.f32 %v1768_v1, 0.0  ;;  %3103 = vmatpush3.bf16.msra.mxu1 %v1814_v54 }
 0x834   :  { %v1816_v3 = vpack.c.bf16 %v1806_v52, %v1805_v50  ;;  %3104 = vmatprep.subr.bf16.mxu1 %v3303_v24  ;;  %v2552_v50 = vld [vmem:[%s4017_s8 + $0xa] ss:$0 sm:$0xff] }
 0x835   :  { %v1815_v4 = vpack.c.bf16 %v1804_v49, %v1803_v47  ;;  %v3074_v5 = vpop.f32.mrb[76].mxu1 }
 0x836   :  { %v1789_v6 = vadd.f32 %v3074_v5, %v2486_v25  ;;  %v1780_v7 = vpop.f32.mrb[77].mxu1 }
 0x837   :  { %v1781_v8 = vadd.f32 %v2486_v25, %v1780_v7  ;;  %v3075_v9 = vpop.f32.mrb[78].mxu1  ;;  %3105 = vmatpush3.bf16.msra.mxu1 %v1815_v4 }
 0x838   :  { %v1792_v10 = vadd.f32 %v3075_v9, %v2486_v25  ;;  %v1783_v56 = vpop.f32.mrb[79].mxu1  ;;  %3106 = vmatprep.subr.bf16.mxu1 %v3303_v24  ;;  %v1809_v12 = vmax.f32 %v1789_v6, 0.0 }
 0x839   :  { %v1784_v58 = vadd.f32 %v2486_v25, %v1783_v56  ;;  %v1807_v23 = vmax.f32 %v1781_v8, 0.0  ;;  %v3268_v25 = vld [vmem:[%s4020_s6 + $0x10] sm:$0xff]  }
 0x83a   :  { %v1810_v17 = vmax.f32 %v1792_v10, 0.0 }
 0x83b   :  { %v1808_v14 = vmax.f32 %v1784_v58, 0.0  ;;  %3107 = vmatpush3.bf16.msra.mxu1 %v1816_v3 }
 0x83c   :  { %v1818_v15 = vpack.c.bf16 %v1810_v17, %v1809_v12  ;;  %3108 = vmatprep.subr.bf16.mxu1 %v3303_v24 }
 0x83d   :  { %v1817_v20 = vpack.c.bf16 %v1808_v14, %v1807_v23 }
 0x83f   :  { %3109 = vmatpush3.bf16.msra.mxu1 %v1817_v20 }
 0x840   :  { %3110 = vmatprep.subr.bf16.mxu1 %v3303_v24 }
 0x843   :  { %3111 = vmatpush3.bf16.msra.mxu1 %v1818_v15 }
 0x844   :  { %3136 = vmatprep.subr.bf16.mxu1 %v3303_v24 }
 0x846   :  { %3113 = vmatmul.mubr.bf16.vlgmr.msra.gmra.mrb[80].mxu1 %v3680_v2  ;;  %v3270_v2 = vld [vmem:[%s4020_s6 + $0x18] sm:$0xff]  }
 0x847   :  { %3137 = vmatpush3.bf16.msra.mxu1 %v3264_v21  ;;  %3152 = vmatprep.mubr.msk.bf16.mxu1 %vm3304_vm0, %v3303_v24 }
 0x848   :  { %3138 = vmatprep.subr.bf16.mxu1 %v3303_v24 }
 0x84b   :  { %3139 = vmatpush3.bf16.msra.mxu1 %v3266_v22 }
 0x84c   :  { %3140 = vmatprep.subr.bf16.mxu1 %v3303_v24  ;;  %v2044_v31 = vpop.f32.mrb[72].mxu0 }
 0x84d   :  { %v3134_v32 = vpop.f32.mrb[73].mxu0 }
 0x84e   :  { %v2047_v33 = vpop.f32.mrb[74].mxu0 }
 0x84f   :  { %3141 = vmatpush3.bf16.msra.mxu1 %v3268_v25  ;;  %v3135_v38 = vpop.f32.mrb[75].mxu0 }
 0x850   :  { %3142 = vmatprep.subr.bf16.mxu1 %v3303_v24 }
 0x853   :  { %3143 = vmatpush3.bf16.msra.mxu1 %v3270_v2 }
 0x854   :  { %3144 = vmatprep.subr.bf16.mxu1 %v3303_v24 }
 0x857   :  { %3145 = vmatpush3.bf16.msra.mxu1 %v3272_v26 }
 0x858   :  { %3146 = vmatprep.subr.bf16.mxu1 %v3303_v24 }
 0x85b   :  { %3147 = vmatpush3.bf16.msra.mxu1 %v3274_v27 }
 0x85c   :  { %3148 = vmatprep.subr.bf16.mxu1 %v3303_v24 }
 0x85f   :  { %3149 = vmatpush3.bf16.msra.mxu1 %v3276_v28 }
 0x860   :  { %3150 = vmatprep.subr.bf16.mxu1 %v3303_v24 }
 0x863   :  { %3151 = vmatpush3.bf16.msra.mxu1 %v3278_v29 }
 0x864   :  { %3176 = vmatprep.subr.bf16.mxu1 %v3303_v24 }
 0x866   :  { %3153 = vmatmul.mubr.bf16.vlgmr.msra.gmra.mrb[84].mxu1 %v1927_v16  ;;  %v3290_v16 = vld [vmem:[%s4021_s7 + $0x18] sm:$0xff]  }
 0x867   :  { %3192 = vmatprep.mubr.msk.bf16.mxu1 %vm3304_vm0, %v3303_v24  ;;  %3177 = vmatpush3.bf16.msra.mxu1 %v3287_v37 }
 0x868   :  { %3178 = vmatprep.subr.bf16.mxu1 %v3303_v24 }
 0x86b   :  { %3179 = vmatpush3.bf16.msra.mxu1 %v3288_v11 }
 0x86c   :  { %3180 = vmatprep.subr.bf16.mxu1 %v3303_v24 }
 0x86f   :  { %3181 = vmatpush3.bf16.msra.mxu1 %v3289_v13 }
 0x870   :  { %3182 = vmatprep.subr.bf16.mxu1 %v3303_v24 }
 0x873   :  { %3183 = vmatpush3.bf16.msra.mxu1 %v3290_v16 }
 0x874   :  { %3184 = vmatprep.subr.bf16.mxu1 %v3303_v24 }
 0x877   :  { %3185 = vmatpush3.bf16.msra.mxu1 %v3291_v19 }
 0x878   :  { %3186 = vmatprep.subr.bf16.mxu1 %v3303_v24 }
 0x87b   :  { %3187 = vmatpush3.bf16.msra.mxu1 %v3292_v46 }
 0x87c   :  { %3188 = vmatprep.subr.bf16.mxu1 %v3303_v24 }
 0x87f   :  { %3189 = vmatpush3.bf16.msra.mxu1 %v3293_v48 }
 0x880   :  { %3190 = vmatprep.subr.bf16.mxu1 %v3303_v24 }
 0x883   :  { %3191 = vmatpush3.bf16.msra.mxu1 %v3294_v51 }
 0x919   :  { %v1918_v39 = vpop.f32.mrb[80].mxu1 }
 0x91a   :  { %v3114_v40 = vpop.f32.mrb[81].mxu1 }
 0x91b   :  { %v1921_v41 = vpop.f32.mrb[82].mxu1 }
 0x91c   :  { %v2140_v18 = vpack.c.bf16 %v1921_v41, %v1918_v39  ;;  %v3115_v36 = vpop.f32.mrb[83].mxu1 }
 0x91e   :  { %3173 = vmatmul.mubr.bf16.vlgmr.msra.gmra.mrb[76].mxu0 %v2140_v18 }
 0x939   :  { %v2133_v35 = vpop.f32.mrb[84].mxu1 }
 0x93a   :  { %v2134_v42 = vadd.f32 %v2133_v35, %v2044_v31  ;;  %v3154_v43 = vpop.f32.mrb[85].mxu1 }
 0x93b   :  { %v2136_v44 = vpop.f32.mrb[86].mxu1 }
 0x93c   :  { %v2137_v34 = vadd.f32 %v2136_v44, %v2047_v33  ;;  %v3155_v45 = vpop.f32.mrb[87].mxu1 }
 0x9f1   :  { %v2240_v54 = vpop.f32.mrb[76].mxu0 }
 0x9f2   :  { %v2247_v55 = vadd.f32 %v2240_v54, %v2134_v42  ;;  %v3174_v57 = vpop.f32.mrb[77].mxu0 }
 0x9f3   :  { %v2243_v59 = vpop.f32.mrb[78].mxu0 }
 0x9f4   :  { %v2253_v60 = vadd.f32 %v2551_v53, %v2247_v55  ;;  %v2248_v61 = vadd.f32 %v2243_v59, %v2137_v34  ;;  %v3175_v62 = vpop.f32.mrb[79].mxu0 }
 0x9f6   :  { %v2254_v63 = vadd.f32 %v2551_v53, %v2248_v61  ;;  %v2255_v0 = vmax.f32 %v2253_v60, 0.0 }
 0x9f8   :  { %v2256_v1 = vmax.f32 %v2254_v63, 0.0 }
 0x9fa   :  { %v2257_v24 = vpack.c.bf16 %v2256_v1, %v2255_v0 }
 0x9fc   :  { %3193 = vmatmul.mubr.bf16.vlgmr.msra.gmra.mrb[88].mxu1 %v2257_v24 }
 0xacf   :  { %v2360_v52 = vpop.f32.mrb[88].mxu1 }
 0xad0   :  { %v2361_v47 = vadd.f32 %v2552_v50, %v2360_v52  ;;  %v3194_v49 = vpop.f32.mrb[89].mxu1 }
 0xad1   :  { %v2363_v3 = vpop.f32.mrb[90].mxu1 }
 0xad2   :  { %2367 = vst [vmem:[%s4022_s9] sm:$0xff] %v2361_v47  ;;  %v2364_v4 = vadd.f32 %v2552_v50, %v2363_v3  ;;  %v3195_v5 = vpop.f32.mrb[91].mxu1 }
 0xad4   :  { %2368 = vst [vmem:[%s4022_s9 + $0x8] sm:$0xff] %v2364_v4 }

</bundles_post_ra>
